<compile_context>
chip_gen: v7x
topology: tpu7x:2x2x1
jax: 0.10.0
libtpu: 0.0.40
codegen_flags: <defaults>
</compile_context>

<pallas_src>
import math

import jax
import jax.numpy as jnp
import numpy as np
from jax import lax
from jax.experimental import pallas as pl
from jax.experimental.pallas import tpu as pltpu


_VMEM = pl.BlockSpec(memory_space=pltpu.MemorySpace.VMEM)


# ----------------------------------------------------------------------------
# GRU cell math (gate order r, z, n — matches torch.nn.GRU's stacked layout).
# gi already contains b_ih (all gates) + b_hh for r/z; b_hn (pre-broadcast to
# (B,H)) is added to the recurrent n-gate before scaling by r.
# ----------------------------------------------------------------------------
def _gru_cell(gi, gh, h, b_hn_b, H):
    r = jax.nn.sigmoid(gi[:, :H] + gh[:, :H])
    z = jax.nn.sigmoid(gi[:, H:2 * H] + gh[:, H:2 * H])
    n = jnp.tanh(gi[:, 2 * H:] + r * (gh[:, 2 * H:] + b_hn_b))
    return (1.0 - z) * n + z * h


# ----------------------------------------------------------------------------
# One fused kernel: for each layer
#   gi = x_slab @ w_ih^T + b            (single (T*B,Din)x(Din,3H) MXU matmul)
#   T-step recurrence with fused (B,H)x(H,3H) recurrent matmul
# then fc1/ReLU/fc2/sigmoid on the last hidden state. Only (B,1) leaves VMEM.
# ----------------------------------------------------------------------------
def make_fused_gru_kernel(T, B, H, num_layers):
    def kernel(*refs):
        # refs = x_ref,
        #        [w_ih_t, b_gates, w_hh_t, b_hn] * num_layers,
        #        w1_t, b1, w2_t, b2,
        #        o_ref,
        #        gi_scr (T*B,3H), out_scr (T*B,H)
        x_ref = refs[0]
        layer_refs = refs[1:1 + 4 * num_layers]
        w1_ref, b1_ref, w2_ref, b2_ref = refs[1 + 4 * num_layers:
                                              5 + 4 * num_layers]
        o_ref = refs[5 + 4 * num_layers]
        gi_scr = refs[6 + 4 * num_layers]
        out_scr = refs[7 + 4 * num_layers]

        x_cur = x_ref[...]                       # (T*B, Din) value, VMEM-resident
        h_last = jnp.zeros((B, H), jnp.float32)

        for li in range(num_layers):
            w_ih_t_ref, b_g_ref, w_hh_t_ref, b_hn_ref = layer_refs[4 * li:4 * li + 4]

            # Input projection for all time steps at once (parallel MXU matmul).
            gi_scr[...] = (
                jnp.dot(x_cur, w_ih_t_ref[...],
                        preferred_element_type=jnp.float32)
                + b_g_ref[...]
            )

            whh = w_hh_t_ref[...]                                # (H, 3H), once
            b_hn_b = jnp.broadcast_to(b_hn_ref[...], (B, H))     # hoisted
            is_last = (li == num_layers - 1)

            def step(t, h, whh=whh, b_hn_b=b_hn_b, is_last=is_last):
                off = pl.multiple_of(t * B, B)
                gi_t = gi_scr[pl.ds(off, B), :]                  # (B, 3H)
                gh = jnp.dot(h, whh, preferred_element_type=jnp.float32)
                h_new = _gru_cell(gi_t, gh, h, b_hn_b, H)
                if not is_last:
                    out_scr[pl.ds(off, B), :] = h_new            # VMEM-only store
                return h_new

            h_last = lax.fori_loop(0, T, step,
                                   jnp.zeros((B, H), jnp.float32), unroll=True)

            if not is_last:
                x_cur = out_scr[...]                             # (T*B, H)

        # Fused MLP head: fc1 -> ReLU -> fc2 -> sigmoid.
        z1 = jnp.dot(h_last, w1_ref[...], preferred_element_type=jnp.float32)
        z1 = jnp.maximum(z1 + b1_ref[...], 0.0)
        z2 = jnp.dot(z1, w2_ref[...], preferred_element_type=jnp.float32)
        o_ref[...] = jax.nn.sigmoid(z2 + b2_ref[...])

    return kernel


def gru_model_forward(x_btd, kparams):
    """x_btd: (B, T, input_size), batch_first like the PyTorch module."""
    B, T, Din = x_btd.shape
    layers = kparams["gru"]
    num_layers = len(layers)
    H = layers[0]["w_hh_t"].shape[0]

    # Time-major, time-batched 2-D slab (T*B, Din).
    x2d = jnp.transpose(x_btd, (1, 0, 2)).astype(jnp.float32).reshape(T * B, Din)

    args = [x2d]
    for layer in layers:
        args += [layer["w_ih_t"], layer["b_gates"], layer["w_hh_t"], layer["b_hn"]]
    args += [kparams["w1_t"], kparams["b1"], kparams["w2_t"], kparams["b2"]]

    return pl.pallas_call(
        make_fused_gru_kernel(T, B, H, num_layers),
        out_shape=jax.ShapeDtypeStruct((B, 1), jnp.float32),
        in_specs=[_VMEM] * len(args),
        out_specs=_VMEM,
        scratch_shapes=[
            pltpu.VMEM((T * B, 3 * H), jnp.float32),   # gi slab (reused per layer)
            pltpu.VMEM((T * B, H), jnp.float32),       # inter-layer hidden slab
        ],
        compiler_params=pltpu.CompilerParams(vmem_limit_bytes=32 * 1024 * 1024),
    )(*args)


# ----------------------------------------------------------------------------
# Parameters: raw PyTorch-style layout (used by the reference) + a prepared,
# kernel-friendly layout (pre-transposed weights, pre-folded biases).
# ----------------------------------------------------------------------------
def init_params(key, input_size, hidden_size, num_layers):
    H = hidden_size

    def unif(k, shape, bound):
        return jax.random.uniform(k, shape, jnp.float32, minval=-bound, maxval=bound)

    kH = 1.0 / math.sqrt(H)
    k32 = 1.0 / math.sqrt(32)
    params = {"gru": []}
    for layer in range(num_layers):
        d_in = input_size if layer == 0 else H
        key, k1, k2, k3, k4 = jax.random.split(key, 5)
        params["gru"].append({
            "w_ih": unif(k1, (3 * H, d_in), kH),   # stacked (r, z, n)
            "w_hh": unif(k2, (3 * H, H), kH),
            "b_ih": unif(k3, (3 * H,), kH),
            "b_hh": unif(k4, (3 * H,), kH),
        })
    key, k1, k2, k3, k4 = jax.random.split(key, 5)
    params["w1"] = unif(k1, (32, H), kH)
    params["b1"] = unif(k2, (32,), kH)
    params["w2"] = unif(k3, (1, 32), k32)
    params["b2"] = unif(k4, (1,), k32)
    return params


def prepare_kernel_params(params):
    kp = {"gru": []}
    for layer in params["gru"]:
        H = layer["w_hh"].shape[1]
        b_ih, b_hh = layer["b_ih"], layer["b_hh"]
        # Fold b_ih (all gates) + b_hh for r/z into the precomputed gi bias.
        b_gates = b_ih + jnp.concatenate(
            [b_hh[: 2 * H], jnp.zeros((H,), jnp.float32)])
        kp["gru"].append({
            "w_ih_t": jnp.transpose(layer["w_ih"]),       # (Din, 3H)
            "w_hh_t": jnp.transpose(layer["w_hh"]),       # (H, 3H)
            "b_gates": b_gates[None, :],                  # (1, 3H)
            "b_hn": b_hh[2 * H:][None, :],                # (1, H)
        })
    kp["w1_t"] = jnp.transpose(params["w1"])              # (H, 32)
    kp["b1"] = params["b1"][None, :]                      # (1, 32)
    kp["w2_t"] = jnp.transpose(params["w2"])              # (32, 1)
    kp["b2"] = params["b2"][None, :]                      # (1, 1)
    return kp


# ----------------------------------------------------------------------------
# Pure-JAX reference (torch.nn.GRU semantics, raw params) for correctness.
# ----------------------------------------------------------------------------
def reference_forward(x_btd, params):
    x = jnp.transpose(x_btd, (1, 0, 2)).astype(jnp.float32)   # (T, B, Din)
    B = x.shape[1]
    for layer in params["gru"]:
        w_ih, w_hh = layer["w_ih"], layer["w_hh"]
        b_ih, b_hh = layer["b_ih"], layer["b_hh"]
        H = w_hh.shape[1]

        def step(h, xt, w_ih=w_ih, w_hh=w_hh, b_ih=b_ih, b_hh=b_hh, H=H):
            gi = xt @ w_ih.T + b_ih
            gh = h @ w_hh.T + b_hh
            r = jax.nn.sigmoid(gi[:, :H] + gh[:, :H])
            z = jax.nn.sigmoid(gi[:, H:2 * H] + gh[:, H:2 * H])
            n = jnp.tanh(gi[:, 2 * H:] + r * gh[:, 2 * H:])
            h_new = (1.0 - z) * n + z * h
            return h_new, h_new

        _, outs = jax.lax.scan(step, jnp.zeros((B, H), jnp.float32), x)
        x = outs
    h_last = x[-1]
    z1 = jnp.maximum(h_last @ params["w1"].T + params["b1"], 0.0)
    z2 = z1 @ params["w2"].T + params["b2"]
    return jax.nn.sigmoid(z2)


if __name__ == "__main__":
    B, T, input_size, hidden_size, num_layers = 2, 8, 8, 32, 2

    key = jax.random.PRNGKey(0)
    key, pkey, xkey = jax.random.split(key, 3)
    params = init_params(pkey, input_size, hidden_size, num_layers)
    kparams = prepare_kernel_params(params)
    x = jax.random.normal(xkey, (B, T, input_size), jnp.float32)

    out = jax.block_until_ready(gru_model_forward(x, kparams))
    ref = jax.block_until_ready(reference_forward(x, params))

    np.testing.assert_allclose(np.asarray(out), np.asarray(ref),
                               rtol=1e-4, atol=1e-5)
    assert out.shape == (B, 1)
    print("KERNEL_OK")
</pallas_src>

<mosaic_0001>
module attributes {stable_mosaic.version = 11 : i64} {
  func.func @kernel(%arg0: memref<16x8xf32, #tpu.memory_space<vmem>>, %arg1: memref<8x96xf32, #tpu.memory_space<vmem>>, %arg2: memref<1x96xf32, #tpu.memory_space<vmem>>, %arg3: memref<32x96xf32, #tpu.memory_space<vmem>>, %arg4: memref<1x32xf32, #tpu.memory_space<vmem>>, %arg5: memref<32x96xf32, #tpu.memory_space<vmem>>, %arg6: memref<1x96xf32, #tpu.memory_space<vmem>>, %arg7: memref<32x96xf32, #tpu.memory_space<vmem>>, %arg8: memref<1x32xf32, #tpu.memory_space<vmem>>, %arg9: memref<32x32xf32, #tpu.memory_space<vmem>>, %arg10: memref<1x32xf32, #tpu.memory_space<vmem>>, %arg11: memref<32x1xf32, #tpu.memory_space<vmem>>, %arg12: memref<1x1xf32, #tpu.memory_space<vmem>>, %arg13: memref<2x1xf32, #tpu.memory_space<vmem>>, %arg14: memref<16x96xf32, #tpu.memory_space<vmem>>, %arg15: memref<16x32xf32, #tpu.memory_space<vmem>>) attributes {dimension_semantics = [], scalar_prefetch = 0 : i64, scratch_operands = 2 : i64, tpu.core_type = #tpu.core_type<tc>} {
    %c0 = arith.constant 0 : index
    %c0_0 = arith.constant 0 : index
    %0 = vector.load %arg0[%c0, %c0_0] : memref<16x8xf32, #tpu.memory_space<vmem>>, vector<16x8xf32>
    %c0_1 = arith.constant 0 : index
    %c0_2 = arith.constant 0 : index
    %1 = vector.load %arg1[%c0_1, %c0_2] : memref<8x96xf32, #tpu.memory_space<vmem>>, vector<8x96xf32>
    %cst = arith.constant dense<0.000000e+00> : vector<16x96xf32>
    %2 = tpu.matmul %0, %1, %cst {dimension_numbers = #tpu.dot_dimension_numbers<[1], [0], [0], [1], [0, 0, 1, 1], [], []>} : vector<16x8xf32>, vector<8x96xf32>, vector<16x96xf32> -> vector<16x96xf32>
    %c0_3 = arith.constant 0 : index
    %c0_4 = arith.constant 0 : index
    %3 = vector.load %arg2[%c0_3, %c0_4] : memref<1x96xf32, #tpu.memory_space<vmem>>, vector<1x96xf32>
    %4 = vector.broadcast %3 : vector<1x96xf32> to vector<16x96xf32>
    %5 = arith.addf %2, %4 : vector<16x96xf32>
    %c0_5 = arith.constant 0 : index
    %c0_6 = arith.constant 0 : index
    %6 = vector.load %arg14[%c0_5, %c0_6] : memref<16x96xf32, #tpu.memory_space<vmem>>, vector<16x96xf32>
    tpu.vector_store %arg14[%c0_5, %c0_6], %5 {strides = array<i32>} : memref<16x96xf32, #tpu.memory_space<vmem>>, vector<16x96xf32>,
    %c0_7 = arith.constant 0 : index
    %c0_8 = arith.constant 0 : index
    %7 = vector.load %arg3[%c0_7, %c0_8] : memref<32x96xf32, #tpu.memory_space<vmem>>, vector<32x96xf32>
    %c0_9 = arith.constant 0 : index
    %c0_10 = arith.constant 0 : index
    %8 = vector.load %arg4[%c0_9, %c0_10] : memref<1x32xf32, #tpu.memory_space<vmem>>, vector<1x32xf32>
    %9 = vector.shape_cast %8 : vector<1x32xf32> to vector<1x32xf32>
    %10 = vector.broadcast %9 : vector<1x32xf32> to vector<2x32xf32>
    %cst_11 = arith.constant 0.000000e+00 : f32
    %11 = vector.broadcast %cst_11 : f32 to vector<2x32xf32>
    %c0_i32 = arith.constant 0 : i32
    %c2_i32 = arith.constant 2 : i32
    %12 = arith.muli %c0_i32, %c2_i32 : i32
    %13 = tpu.assume_multiple %12, 2 : i32
    %14 = arith.index_cast %13 : i32 to index
    %c0_12 = arith.constant 0 : index
    %15 = vector.load %arg14[%14, %c0_12] : memref<16x96xf32, #tpu.memory_space<vmem>>, vector<2x96xf32>
    %cst_13 = arith.constant dense<0.000000e+00> : vector<2x96xf32>
    %16 = tpu.matmul %11, %7, %cst_13 {dimension_numbers = #tpu.dot_dimension_numbers<[1], [0], [0], [1], [0, 0, 1, 1], [], []>} : vector<2x32xf32>, vector<32x96xf32>, vector<2x96xf32> -> vector<2x96xf32>
    %17 = vector.extract_strided_slice %15 {offsets = [0, 0], sizes = [2, 32], strides = [1, 1]} : vector<2x96xf32> to vector<2x32xf32>
    %18 = vector.extract_strided_slice %16 {offsets = [0, 0], sizes = [2, 32], strides = [1, 1]} : vector<2x96xf32> to vector<2x32xf32>
    %19 = arith.addf %17, %18 : vector<2x32xf32>
    %20 = arith.negf %19 : vector<2x32xf32>
    %21 = math.exp %20 : vector<2x32xf32>
    %cst_14 = arith.constant 1.000000e+00 : f32
    %22 = vector.broadcast %cst_14 : f32 to vector<2x32xf32>
    %23 = arith.addf %22, %21 : vector<2x32xf32>
    %24 = arith.divf %22, %23 : vector<2x32xf32>
    %25 = vector.extract_strided_slice %15 {offsets = [0, 32], sizes = [2, 32], strides = [1, 1]} : vector<2x96xf32> to vector<2x32xf32>
    %26 = vector.extract_strided_slice %16 {offsets = [0, 32], sizes = [2, 32], strides = [1, 1]} : vector<2x96xf32> to vector<2x32xf32>
    %27 = arith.addf %25, %26 : vector<2x32xf32>
    %28 = arith.negf %27 : vector<2x32xf32>
    %29 = math.exp %28 : vector<2x32xf32>
    %cst_15 = arith.constant 1.000000e+00 : f32
    %30 = vector.broadcast %cst_15 : f32 to vector<2x32xf32>
    %31 = arith.addf %30, %29 : vector<2x32xf32>
    %32 = arith.divf %30, %31 : vector<2x32xf32>
    %33 = vector.extract_strided_slice %15 {offsets = [0, 64], sizes = [2, 32], strides = [1, 1]} : vector<2x96xf32> to vector<2x32xf32>
    %34 = vector.extract_strided_slice %16 {offsets = [0, 64], sizes = [2, 32], strides = [1, 1]} : vector<2x96xf32> to vector<2x32xf32>
    %35 = arith.addf %34, %10 : vector<2x32xf32>
    %36 = arith.mulf %24, %35 : vector<2x32xf32>
    %37 = arith.addf %33, %36 : vector<2x32xf32>
    %38 = math.tanh %37 : vector<2x32xf32>
    %cst_16 = arith.constant 1.000000e+00 : f32
    %39 = vector.broadcast %cst_16 : f32 to vector<2x32xf32>
    %40 = arith.subf %39, %32 : vector<2x32xf32>
    %41 = arith.mulf %40, %38 : vector<2x32xf32>
    %42 = arith.mulf %32, %11 : vector<2x32xf32>
    %43 = arith.addf %41, %42 : vector<2x32xf32>
    %44 = arith.index_cast %13 : i32 to index
    %c0_17 = arith.constant 0 : index
    %45 = vector.load %arg15[%44, %c0_17] : memref<16x32xf32, #tpu.memory_space<vmem>>, vector<2x32xf32>
    tpu.vector_store %arg15[%44, %c0_17], %43 {strides = array<i32>} : memref<16x32xf32, #tpu.memory_space<vmem>>, vector<2x32xf32>,
    %c1_i32 = arith.constant 1 : i32
    %c2_i32_18 = arith.constant 2 : i32
    %46 = arith.muli %c1_i32, %c2_i32_18 : i32
    %47 = tpu.assume_multiple %46, 2 : i32
    %48 = arith.index_cast %47 : i32 to index
    %c0_19 = arith.constant 0 : index
    %49 = vector.load %arg14[%48, %c0_19] : memref<16x96xf32, #tpu.memory_space<vmem>>, vector<2x96xf32>
    %cst_20 = arith.constant dense<0.000000e+00> : vector<2x96xf32>
    %50 = tpu.matmul %43, %7, %cst_20 {dimension_numbers = #tpu.dot_dimension_numbers<[1], [0], [0], [1], [0, 0, 1, 1], [], []>} : vector<2x32xf32>, vector<32x96xf32>, vector<2x96xf32> -> vector<2x96xf32>
    %51 = vector.extract_strided_slice %49 {offsets = [0, 0], sizes = [2, 32], strides = [1, 1]} : vector<2x96xf32> to vector<2x32xf32>
    %52 = vector.extract_strided_slice %50 {offsets = [0, 0], sizes = [2, 32], strides = [1, 1]} : vector<2x96xf32> to vector<2x32xf32>
    %53 = arith.addf %51, %52 : vector<2x32xf32>
    %54 = arith.negf %53 : vector<2x32xf32>
    %55 = math.exp %54 : vector<2x32xf32>
    %cst_21 = arith.constant 1.000000e+00 : f32
    %56 = vector.broadcast %cst_21 : f32 to vector<2x32xf32>
    %57 = arith.addf %56, %55 : vector<2x32xf32>
    %58 = arith.divf %56, %57 : vector<2x32xf32>
    %59 = vector.extract_strided_slice %49 {offsets = [0, 32], sizes = [2, 32], strides = [1, 1]} : vector<2x96xf32> to vector<2x32xf32>
    %60 = vector.extract_strided_slice %50 {offsets = [0, 32], sizes = [2, 32], strides = [1, 1]} : vector<2x96xf32> to vector<2x32xf32>
    %61 = arith.addf %59, %60 : vector<2x32xf32>
    %62 = arith.negf %61 : vector<2x32xf32>
    %63 = math.exp %62 : vector<2x32xf32>
    %cst_22 = arith.constant 1.000000e+00 : f32
    %64 = vector.broadcast %cst_22 : f32 to vector<2x32xf32>
    %65 = arith.addf %64, %63 : vector<2x32xf32>
    %66 = arith.divf %64, %65 : vector<2x32xf32>
    %67 = vector.extract_strided_slice %49 {offsets = [0, 64], sizes = [2, 32], strides = [1, 1]} : vector<2x96xf32> to vector<2x32xf32>
    %68 = vector.extract_strided_slice %50 {offsets = [0, 64], sizes = [2, 32], strides = [1, 1]} : vector<2x96xf32> to vector<2x32xf32>
    %69 = arith.addf %68, %10 : vector<2x32xf32>
    %70 = arith.mulf %58, %69 : vector<2x32xf32>
    %71 = arith.addf %67, %70 : vector<2x32xf32>
    %72 = math.tanh %71 : vector<2x32xf32>
    %cst_23 = arith.constant 1.000000e+00 : f32
    %73 = vector.broadcast %cst_23 : f32 to vector<2x32xf32>
    %74 = arith.subf %73, %66 : vector<2x32xf32>
    %75 = arith.mulf %74, %72 : vector<2x32xf32>
    %76 = arith.mulf %66, %43 : vector<2x32xf32>
    %77 = arith.addf %75, %76 : vector<2x32xf32>
    %78 = arith.index_cast %47 : i32 to index
    %c0_24 = arith.constant 0 : index
    %79 = vector.load %arg15[%78, %c0_24] : memref<16x32xf32, #tpu.memory_space<vmem>>, vector<2x32xf32>
    tpu.vector_store %arg15[%78, %c0_24], %77 {strides = array<i32>} : memref<16x32xf32, #tpu.memory_space<vmem>>, vector<2x32xf32>,
    %c2_i32_25 = arith.constant 2 : i32
    %c2_i32_26 = arith.constant 2 : i32
    %80 = arith.muli %c2_i32_25, %c2_i32_26 : i32
    %81 = tpu.assume_multiple %80, 2 : i32
    %82 = arith.index_cast %81 : i32 to index
    %c0_27 = arith.constant 0 : index
    %83 = vector.load %arg14[%82, %c0_27] : memref<16x96xf32, #tpu.memory_space<vmem>>, vector<2x96xf32>
    %cst_28 = arith.constant dense<0.000000e+00> : vector<2x96xf32>
    %84 = tpu.matmul %77, %7, %cst_28 {dimension_numbers = #tpu.dot_dimension_numbers<[1], [0], [0], [1], [0, 0, 1, 1], [], []>} : vector<2x32xf32>, vector<32x96xf32>, vector<2x96xf32> -> vector<2x96xf32>
    %85 = vector.extract_strided_slice %83 {offsets = [0, 0], sizes = [2, 32], strides = [1, 1]} : vector<2x96xf32> to vector<2x32xf32>
    %86 = vector.extract_strided_slice %84 {offsets = [0, 0], sizes = [2, 32], strides = [1, 1]} : vector<2x96xf32> to vector<2x32xf32>
    %87 = arith.addf %85, %86 : vector<2x32xf32>
    %88 = arith.negf %87 : vector<2x32xf32>
    %89 = math.exp %88 : vector<2x32xf32>
    %cst_29 = arith.constant 1.000000e+00 : f32
    %90 = vector.broadcast %cst_29 : f32 to vector<2x32xf32>
    %91 = arith.addf %90, %89 : vector<2x32xf32>
    %92 = arith.divf %90, %91 : vector<2x32xf32>
    %93 = vector.extract_strided_slice %83 {offsets = [0, 32], sizes = [2, 32], strides = [1, 1]} : vector<2x96xf32> to vector<2x32xf32>
    %94 = vector.extract_strided_slice %84 {offsets = [0, 32], sizes = [2, 32], strides = [1, 1]} : vector<2x96xf32> to vector<2x32xf32>
    %95 = arith.addf %93, %94 : vector<2x32xf32>
    %96 = arith.negf %95 : vector<2x32xf32>
    %97 = math.exp %96 : vector<2x32xf32>
    %cst_30 = arith.constant 1.000000e+00 : f32
    %98 = vector.broadcast %cst_30 : f32 to vector<2x32xf32>
    %99 = arith.addf %98, %97 : vector<2x32xf32>
    %100 = arith.divf %98, %99 : vector<2x32xf32>
    %101 = vector.extract_strided_slice %83 {offsets = [0, 64], sizes = [2, 32], strides = [1, 1]} : vector<2x96xf32> to vector<2x32xf32>
    %102 = vector.extract_strided_slice %84 {offsets = [0, 64], sizes = [2, 32], strides = [1, 1]} : vector<2x96xf32> to vector<2x32xf32>
    %103 = arith.addf %102, %10 : vector<2x32xf32>
    %104 = arith.mulf %92, %103 : vector<2x32xf32>
    %105 = arith.addf %101, %104 : vector<2x32xf32>
    %106 = math.tanh %105 : vector<2x32xf32>
    %cst_31 = arith.constant 1.000000e+00 : f32
    %107 = vector.broadcast %cst_31 : f32 to vector<2x32xf32>
    %108 = arith.subf %107, %100 : vector<2x32xf32>
    %109 = arith.mulf %108, %106 : vector<2x32xf32>
    %110 = arith.mulf %100, %77 : vector<2x32xf32>
    %111 = arith.addf %109, %110 : vector<2x32xf32>
    %112 = arith.index_cast %81 : i32 to index
    %c0_32 = arith.constant 0 : index
    %113 = vector.load %arg15[%112, %c0_32] : memref<16x32xf32, #tpu.memory_space<vmem>>, vector<2x32xf32>
    tpu.vector_store %arg15[%112, %c0_32], %111 {strides = array<i32>} : memref<16x32xf32, #tpu.memory_space<vmem>>, vector<2x32xf32>,
    %c3_i32 = arith.constant 3 : i32
    %c2_i32_33 = arith.constant 2 : i32
    %114 = arith.muli %c3_i32, %c2_i32_33 : i32
    %115 = tpu.assume_multiple %114, 2 : i32
    %116 = arith.index_cast %115 : i32 to index
    %c0_34 = arith.constant 0 : index
    %117 = vector.load %arg14[%116, %c0_34] : memref<16x96xf32, #tpu.memory_space<vmem>>, vector<2x96xf32>
    %cst_35 = arith.constant dense<0.000000e+00> : vector<2x96xf32>
    %118 = tpu.matmul %111, %7, %cst_35 {dimension_numbers = #tpu.dot_dimension_numbers<[1], [0], [0], [1], [0, 0, 1, 1], [], []>} : vector<2x32xf32>, vector<32x96xf32>, vector<2x96xf32> -> vector<2x96xf32>
    %119 = vector.extract_strided_slice %117 {offsets = [0, 0], sizes = [2, 32], strides = [1, 1]} : vector<2x96xf32> to vector<2x32xf32>
    %120 = vector.extract_strided_slice %118 {offsets = [0, 0], sizes = [2, 32], strides = [1, 1]} : vector<2x96xf32> to vector<2x32xf32>
    %121 = arith.addf %119, %120 : vector<2x32xf32>
    %122 = arith.negf %121 : vector<2x32xf32>
    %123 = math.exp %122 : vector<2x32xf32>
    %cst_36 = arith.constant 1.000000e+00 : f32
    %124 = vector.broadcast %cst_36 : f32 to vector<2x32xf32>
    %125 = arith.addf %124, %123 : vector<2x32xf32>
    %126 = arith.divf %124, %125 : vector<2x32xf32>
    %127 = vector.extract_strided_slice %117 {offsets = [0, 32], sizes = [2, 32], strides = [1, 1]} : vector<2x96xf32> to vector<2x32xf32>
    %128 = vector.extract_strided_slice %118 {offsets = [0, 32], sizes = [2, 32], strides = [1, 1]} : vector<2x96xf32> to vector<2x32xf32>
    %129 = arith.addf %127, %128 : vector<2x32xf32>
    %130 = arith.negf %129 : vector<2x32xf32>
    %131 = math.exp %130 : vector<2x32xf32>
    %cst_37 = arith.constant 1.000000e+00 : f32
    %132 = vector.broadcast %cst_37 : f32 to vector<2x32xf32>
    %133 = arith.addf %132, %131 : vector<2x32xf32>
    %134 = arith.divf %132, %133 : vector<2x32xf32>
    %135 = vector.extract_strided_slice %117 {offsets = [0, 64], sizes = [2, 32], strides = [1, 1]} : vector<2x96xf32> to vector<2x32xf32>
    %136 = vector.extract_strided_slice %118 {offsets = [0, 64], sizes = [2, 32], strides = [1, 1]} : vector<2x96xf32> to vector<2x32xf32>
    %137 = arith.addf %136, %10 : vector<2x32xf32>
    %138 = arith.mulf %126, %137 : vector<2x32xf32>
    %139 = arith.addf %135, %138 : vector<2x32xf32>
    %140 = math.tanh %139 : vector<2x32xf32>
    %cst_38 = arith.constant 1.000000e+00 : f32
    %141 = vector.broadcast %cst_38 : f32 to vector<2x32xf32>
    %142 = arith.subf %141, %134 : vector<2x32xf32>
    %143 = arith.mulf %142, %140 : vector<2x32xf32>
    %144 = arith.mulf %134, %111 : vector<2x32xf32>
    %145 = arith.addf %143, %144 : vector<2x32xf32>
    %146 = arith.index_cast %115 : i32 to index
    %c0_39 = arith.constant 0 : index
    %147 = vector.load %arg15[%146, %c0_39] : memref<16x32xf32, #tpu.memory_space<vmem>>, vector<2x32xf32>
    tpu.vector_store %arg15[%146, %c0_39], %145 {strides = array<i32>} : memref<16x32xf32, #tpu.memory_space<vmem>>, vector<2x32xf32>,
    %c4_i32 = arith.constant 4 : i32
    %c2_i32_40 = arith.constant 2 : i32
    %148 = arith.muli %c4_i32, %c2_i32_40 : i32
    %149 = tpu.assume_multiple %148, 2 : i32
    %150 = arith.index_cast %149 : i32 to index
    %c0_41 = arith.constant 0 : index
    %151 = vector.load %arg14[%150, %c0_41] : memref<16x96xf32, #tpu.memory_space<vmem>>, vector<2x96xf32>
    %cst_42 = arith.constant dense<0.000000e+00> : vector<2x96xf32>
    %152 = tpu.matmul %145, %7, %cst_42 {dimension_numbers = #tpu.dot_dimension_numbers<[1], [0], [0], [1], [0, 0, 1, 1], [], []>} : vector<2x32xf32>, vector<32x96xf32>, vector<2x96xf32> -> vector<2x96xf32>
    %153 = vector.extract_strided_slice %151 {offsets = [0, 0], sizes = [2, 32], strides = [1, 1]} : vector<2x96xf32> to vector<2x32xf32>
    %154 = vector.extract_strided_slice %152 {offsets = [0, 0], sizes = [2, 32], strides = [1, 1]} : vector<2x96xf32> to vector<2x32xf32>
    %155 = arith.addf %153, %154 : vector<2x32xf32>
    %156 = arith.negf %155 : vector<2x32xf32>
    %157 = math.exp %156 : vector<2x32xf32>
    %cst_43 = arith.constant 1.000000e+00 : f32
    %158 = vector.broadcast %cst_43 : f32 to vector<2x32xf32>
    %159 = arith.addf %158, %157 : vector<2x32xf32>
    %160 = arith.divf %158, %159 : vector<2x32xf32>
    %161 = vector.extract_strided_slice %151 {offsets = [0, 32], sizes = [2, 32], strides = [1, 1]} : vector<2x96xf32> to vector<2x32xf32>
    %162 = vector.extract_strided_slice %152 {offsets = [0, 32], sizes = [2, 32], strides = [1, 1]} : vector<2x96xf32> to vector<2x32xf32>
    %163 = arith.addf %161, %162 : vector<2x32xf32>
    %164 = arith.negf %163 : vector<2x32xf32>
    %165 = math.exp %164 : vector<2x32xf32>
    %cst_44 = arith.constant 1.000000e+00 : f32
    %166 = vector.broadcast %cst_44 : f32 to vector<2x32xf32>
    %167 = arith.addf %166, %165 : vector<2x32xf32>
    %168 = arith.divf %166, %167 : vector<2x32xf32>
    %169 = vector.extract_strided_slice %151 {offsets = [0, 64], sizes = [2, 32], strides = [1, 1]} : vector<2x96xf32> to vector<2x32xf32>
    %170 = vector.extract_strided_slice %152 {offsets = [0, 64], sizes = [2, 32], strides = [1, 1]} : vector<2x96xf32> to vector<2x32xf32>
    %171 = arith.addf %170, %10 : vector<2x32xf32>
    %172 = arith.mulf %160, %171 : vector<2x32xf32>
    %173 = arith.addf %169, %172 : vector<2x32xf32>
    %174 = math.tanh %173 : vector<2x32xf32>
    %cst_45 = arith.constant 1.000000e+00 : f32
    %175 = vector.broadcast %cst_45 : f32 to vector<2x32xf32>
    %176 = arith.subf %175, %168 : vector<2x32xf32>
    %177 = arith.mulf %176, %174 : vector<2x32xf32>
    %178 = arith.mulf %168, %145 : vector<2x32xf32>
    %179 = arith.addf %177, %178 : vector<2x32xf32>
    %180 = arith.index_cast %149 : i32 to index
    %c0_46 = arith.constant 0 : index
    %181 = vector.load %arg15[%180, %c0_46] : memref<16x32xf32, #tpu.memory_space<vmem>>, vector<2x32xf32>
    tpu.vector_store %arg15[%180, %c0_46], %179 {strides = array<i32>} : memref<16x32xf32, #tpu.memory_space<vmem>>, vector<2x32xf32>,
    %c5_i32 = arith.constant 5 : i32
    %c2_i32_47 = arith.constant 2 : i32
    %182 = arith.muli %c5_i32, %c2_i32_47 : i32
    %183 = tpu.assume_multiple %182, 2 : i32
    %184 = arith.index_cast %183 : i32 to index
    %c0_48 = arith.constant 0 : index
    %185 = vector.load %arg14[%184, %c0_48] : memref<16x96xf32, #tpu.memory_space<vmem>>, vector<2x96xf32>
    %cst_49 = arith.constant dense<0.000000e+00> : vector<2x96xf32>
    %186 = tpu.matmul %179, %7, %cst_49 {dimension_numbers = #tpu.dot_dimension_numbers<[1], [0], [0], [1], [0, 0, 1, 1], [], []>} : vector<2x32xf32>, vector<32x96xf32>, vector<2x96xf32> -> vector<2x96xf32>
    %187 = vector.extract_strided_slice %185 {offsets = [0, 0], sizes = [2, 32], strides = [1, 1]} : vector<2x96xf32> to vector<2x32xf32>
    %188 = vector.extract_strided_slice %186 {offsets = [0, 0], sizes = [2, 32], strides = [1, 1]} : vector<2x96xf32> to vector<2x32xf32>
    %189 = arith.addf %187, %188 : vector<2x32xf32>
    %190 = arith.negf %189 : vector<2x32xf32>
    %191 = math.exp %190 : vector<2x32xf32>
    %cst_50 = arith.constant 1.000000e+00 : f32
    %192 = vector.broadcast %cst_50 : f32 to vector<2x32xf32>
    %193 = arith.addf %192, %191 : vector<2x32xf32>
    %194 = arith.divf %192, %193 : vector<2x32xf32>
    %195 = vector.extract_strided_slice %185 {offsets = [0, 32], sizes = [2, 32], strides = [1, 1]} : vector<2x96xf32> to vector<2x32xf32>
    %196 = vector.extract_strided_slice %186 {offsets = [0, 32], sizes = [2, 32], strides = [1, 1]} : vector<2x96xf32> to vector<2x32xf32>
    %197 = arith.addf %195, %196 : vector<2x32xf32>
    %198 = arith.negf %197 : vector<2x32xf32>
    %199 = math.exp %198 : vector<2x32xf32>
    %cst_51 = arith.constant 1.000000e+00 : f32
    %200 = vector.broadcast %cst_51 : f32 to vector<2x32xf32>
    %201 = arith.addf %200, %199 : vector<2x32xf32>
    %202 = arith.divf %200, %201 : vector<2x32xf32>
    %203 = vector.extract_strided_slice %185 {offsets = [0, 64], sizes = [2, 32], strides = [1, 1]} : vector<2x96xf32> to vector<2x32xf32>
    %204 = vector.extract_strided_slice %186 {offsets = [0, 64], sizes = [2, 32], strides = [1, 1]} : vector<2x96xf32> to vector<2x32xf32>
    %205 = arith.addf %204, %10 : vector<2x32xf32>
    %206 = arith.mulf %194, %205 : vector<2x32xf32>
    %207 = arith.addf %203, %206 : vector<2x32xf32>
    %208 = math.tanh %207 : vector<2x32xf32>
    %cst_52 = arith.constant 1.000000e+00 : f32
    %209 = vector.broadcast %cst_52 : f32 to vector<2x32xf32>
    %210 = arith.subf %209, %202 : vector<2x32xf32>
    %211 = arith.mulf %210, %208 : vector<2x32xf32>
    %212 = arith.mulf %202, %179 : vector<2x32xf32>
    %213 = arith.addf %211, %212 : vector<2x32xf32>
    %214 = arith.index_cast %183 : i32 to index
    %c0_53 = arith.constant 0 : index
    %215 = vector.load %arg15[%214, %c0_53] : memref<16x32xf32, #tpu.memory_space<vmem>>, vector<2x32xf32>
    tpu.vector_store %arg15[%214, %c0_53], %213 {strides = array<i32>} : memref<16x32xf32, #tpu.memory_space<vmem>>, vector<2x32xf32>,
    %c6_i32 = arith.constant 6 : i32
    %c2_i32_54 = arith.constant 2 : i32
    %216 = arith.muli %c6_i32, %c2_i32_54 : i32
    %217 = tpu.assume_multiple %216, 2 : i32
    %218 = arith.index_cast %217 : i32 to index
    %c0_55 = arith.constant 0 : index
    %219 = vector.load %arg14[%218, %c0_55] : memref<16x96xf32, #tpu.memory_space<vmem>>, vector<2x96xf32>
    %cst_56 = arith.constant dense<0.000000e+00> : vector<2x96xf32>
    %220 = tpu.matmul %213, %7, %cst_56 {dimension_numbers = #tpu.dot_dimension_numbers<[1], [0], [0], [1], [0, 0, 1, 1], [], []>} : vector<2x32xf32>, vector<32x96xf32>, vector<2x96xf32> -> vector<2x96xf32>
    %221 = vector.extract_strided_slice %219 {offsets = [0, 0], sizes = [2, 32], strides = [1, 1]} : vector<2x96xf32> to vector<2x32xf32>
    %222 = vector.extract_strided_slice %220 {offsets = [0, 0], sizes = [2, 32], strides = [1, 1]} : vector<2x96xf32> to vector<2x32xf32>
    %223 = arith.addf %221, %222 : vector<2x32xf32>
    %224 = arith.negf %223 : vector<2x32xf32>
    %225 = math.exp %224 : vector<2x32xf32>
    %cst_57 = arith.constant 1.000000e+00 : f32
    %226 = vector.broadcast %cst_57 : f32 to vector<2x32xf32>
    %227 = arith.addf %226, %225 : vector<2x32xf32>
    %228 = arith.divf %226, %227 : vector<2x32xf32>
    %229 = vector.extract_strided_slice %219 {offsets = [0, 32], sizes = [2, 32], strides = [1, 1]} : vector<2x96xf32> to vector<2x32xf32>
    %230 = vector.extract_strided_slice %220 {offsets = [0, 32], sizes = [2, 32], strides = [1, 1]} : vector<2x96xf32> to vector<2x32xf32>
    %231 = arith.addf %229, %230 : vector<2x32xf32>
    %232 = arith.negf %231 : vector<2x32xf32>
    %233 = math.exp %232 : vector<2x32xf32>
    %cst_58 = arith.constant 1.000000e+00 : f32
    %234 = vector.broadcast %cst_58 : f32 to vector<2x32xf32>
    %235 = arith.addf %234, %233 : vector<2x32xf32>
    %236 = arith.divf %234, %235 : vector<2x32xf32>
    %237 = vector.extract_strided_slice %219 {offsets = [0, 64], sizes = [2, 32], strides = [1, 1]} : vector<2x96xf32> to vector<2x32xf32>
    %238 = vector.extract_strided_slice %220 {offsets = [0, 64], sizes = [2, 32], strides = [1, 1]} : vector<2x96xf32> to vector<2x32xf32>
    %239 = arith.addf %238, %10 : vector<2x32xf32>
    %240 = arith.mulf %228, %239 : vector<2x32xf32>
    %241 = arith.addf %237, %240 : vector<2x32xf32>
    %242 = math.tanh %241 : vector<2x32xf32>
    %cst_59 = arith.constant 1.000000e+00 : f32
    %243 = vector.broadcast %cst_59 : f32 to vector<2x32xf32>
    %244 = arith.subf %243, %236 : vector<2x32xf32>
    %245 = arith.mulf %244, %242 : vector<2x32xf32>
    %246 = arith.mulf %236, %213 : vector<2x32xf32>
    %247 = arith.addf %245, %246 : vector<2x32xf32>
    %248 = arith.index_cast %217 : i32 to index
    %c0_60 = arith.constant 0 : index
    %249 = vector.load %arg15[%248, %c0_60] : memref<16x32xf32, #tpu.memory_space<vmem>>, vector<2x32xf32>
    tpu.vector_store %arg15[%248, %c0_60], %247 {strides = array<i32>} : memref<16x32xf32, #tpu.memory_space<vmem>>, vector<2x32xf32>,
    %c7_i32 = arith.constant 7 : i32
    %c2_i32_61 = arith.constant 2 : i32
    %250 = arith.muli %c7_i32, %c2_i32_61 : i32
    %251 = tpu.assume_multiple %250, 2 : i32
    %252 = arith.index_cast %251 : i32 to index
    %c0_62 = arith.constant 0 : index
    %253 = vector.load %arg14[%252, %c0_62] : memref<16x96xf32, #tpu.memory_space<vmem>>, vector<2x96xf32>
    %cst_63 = arith.constant dense<0.000000e+00> : vector<2x96xf32>
    %254 = tpu.matmul %247, %7, %cst_63 {dimension_numbers = #tpu.dot_dimension_numbers<[1], [0], [0], [1], [0, 0, 1, 1], [], []>} : vector<2x32xf32>, vector<32x96xf32>, vector<2x96xf32> -> vector<2x96xf32>
    %255 = vector.extract_strided_slice %253 {offsets = [0, 0], sizes = [2, 32], strides = [1, 1]} : vector<2x96xf32> to vector<2x32xf32>
    %256 = vector.extract_strided_slice %254 {offsets = [0, 0], sizes = [2, 32], strides = [1, 1]} : vector<2x96xf32> to vector<2x32xf32>
    %257 = arith.addf %255, %256 : vector<2x32xf32>
    %258 = arith.negf %257 : vector<2x32xf32>
    %259 = math.exp %258 : vector<2x32xf32>
    %cst_64 = arith.constant 1.000000e+00 : f32
    %260 = vector.broadcast %cst_64 : f32 to vector<2x32xf32>
    %261 = arith.addf %260, %259 : vector<2x32xf32>
    %262 = arith.divf %260, %261 : vector<2x32xf32>
    %263 = vector.extract_strided_slice %253 {offsets = [0, 32], sizes = [2, 32], strides = [1, 1]} : vector<2x96xf32> to vector<2x32xf32>
    %264 = vector.extract_strided_slice %254 {offsets = [0, 32], sizes = [2, 32], strides = [1, 1]} : vector<2x96xf32> to vector<2x32xf32>
    %265 = arith.addf %263, %264 : vector<2x32xf32>
    %266 = arith.negf %265 : vector<2x32xf32>
    %267 = math.exp %266 : vector<2x32xf32>
    %cst_65 = arith.constant 1.000000e+00 : f32
    %268 = vector.broadcast %cst_65 : f32 to vector<2x32xf32>
    %269 = arith.addf %268, %267 : vector<2x32xf32>
    %270 = arith.divf %268, %269 : vector<2x32xf32>
    %271 = vector.extract_strided_slice %253 {offsets = [0, 64], sizes = [2, 32], strides = [1, 1]} : vector<2x96xf32> to vector<2x32xf32>
    %272 = vector.extract_strided_slice %254 {offsets = [0, 64], sizes = [2, 32], strides = [1, 1]} : vector<2x96xf32> to vector<2x32xf32>
    %273 = arith.addf %272, %10 : vector<2x32xf32>
    %274 = arith.mulf %262, %273 : vector<2x32xf32>
    %275 = arith.addf %271, %274 : vector<2x32xf32>
    %276 = math.tanh %275 : vector<2x32xf32>
    %cst_66 = arith.constant 1.000000e+00 : f32
    %277 = vector.broadcast %cst_66 : f32 to vector<2x32xf32>
    %278 = arith.subf %277, %270 : vector<2x32xf32>
    %279 = arith.mulf %278, %276 : vector<2x32xf32>
    %280 = arith.mulf %270, %247 : vector<2x32xf32>
    %281 = arith.addf %279, %280 : vector<2x32xf32>
    %282 = arith.index_cast %251 : i32 to index
    %c0_67 = arith.constant 0 : index
    %283 = vector.load %arg15[%282, %c0_67] : memref<16x32xf32, #tpu.memory_space<vmem>>, vector<2x32xf32>
    tpu.vector_store %arg15[%282, %c0_67], %281 {strides = array<i32>} : memref<16x32xf32, #tpu.memory_space<vmem>>, vector<2x32xf32>,
    %c8_i32 = arith.constant 8 : i32
    %c0_68 = arith.constant 0 : index
    %c0_69 = arith.constant 0 : index
    %284 = vector.load %arg15[%c0_68, %c0_69] : memref<16x32xf32, #tpu.memory_space<vmem>>, vector<16x32xf32>
    %c0_70 = arith.constant 0 : index
    %c0_71 = arith.constant 0 : index
    %285 = vector.load %arg5[%c0_70, %c0_71] : memref<32x96xf32, #tpu.memory_space<vmem>>, vector<32x96xf32>
    %cst_72 = arith.constant dense<0.000000e+00> : vector<16x96xf32>
    %286 = tpu.matmul %284, %285, %cst_72 {dimension_numbers = #tpu.dot_dimension_numbers<[1], [0], [0], [1], [0, 0, 1, 1], [], []>} : vector<16x32xf32>, vector<32x96xf32>, vector<16x96xf32> -> vector<16x96xf32>
    %c0_73 = arith.constant 0 : index
    %c0_74 = arith.constant 0 : index
    %287 = vector.load %arg6[%c0_73, %c0_74] : memref<1x96xf32, #tpu.memory_space<vmem>>, vector<1x96xf32>
    %288 = vector.broadcast %287 : vector<1x96xf32> to vector<16x96xf32>
    %289 = arith.addf %286, %288 : vector<16x96xf32>
    %c0_75 = arith.constant 0 : index
    %c0_76 = arith.constant 0 : index
    %290 = vector.load %arg14[%c0_75, %c0_76] : memref<16x96xf32, #tpu.memory_space<vmem>>, vector<16x96xf32>
    tpu.vector_store %arg14[%c0_75, %c0_76], %289 {strides = array<i32>} : memref<16x96xf32, #tpu.memory_space<vmem>>, vector<16x96xf32>,
    %c0_77 = arith.constant 0 : index
    %c0_78 = arith.constant 0 : index
    %291 = vector.load %arg7[%c0_77, %c0_78] : memref<32x96xf32, #tpu.memory_space<vmem>>, vector<32x96xf32>
    %c0_79 = arith.constant 0 : index
    %c0_80 = arith.constant 0 : index
    %292 = vector.load %arg8[%c0_79, %c0_80] : memref<1x32xf32, #tpu.memory_space<vmem>>, vector<1x32xf32>
    %293 = vector.shape_cast %292 : vector<1x32xf32> to vector<1x32xf32>
    %294 = vector.broadcast %293 : vector<1x32xf32> to vector<2x32xf32>
    %cst_81 = arith.constant 0.000000e+00 : f32
    %295 = vector.broadcast %cst_81 : f32 to vector<2x32xf32>
    %c0_i32_82 = arith.constant 0 : i32
    %c2_i32_83 = arith.constant 2 : i32
    %296 = arith.muli %c0_i32_82, %c2_i32_83 : i32
    %297 = tpu.assume_multiple %296, 2 : i32
    %298 = arith.index_cast %297 : i32 to index
    %c0_84 = arith.constant 0 : index
    %299 = vector.load %arg14[%298, %c0_84] : memref<16x96xf32, #tpu.memory_space<vmem>>, vector<2x96xf32>
    %cst_85 = arith.constant dense<0.000000e+00> : vector<2x96xf32>
    %300 = tpu.matmul %295, %291, %cst_85 {dimension_numbers = #tpu.dot_dimension_numbers<[1], [0], [0], [1], [0, 0, 1, 1], [], []>} : vector<2x32xf32>, vector<32x96xf32>, vector<2x96xf32> -> vector<2x96xf32>
    %301 = vector.extract_strided_slice %299 {offsets = [0, 0], sizes = [2, 32], strides = [1, 1]} : vector<2x96xf32> to vector<2x32xf32>
    %302 = vector.extract_strided_slice %300 {offsets = [0, 0], sizes = [2, 32], strides = [1, 1]} : vector<2x96xf32> to vector<2x32xf32>
    %303 = arith.addf %301, %302 : vector<2x32xf32>
    %304 = arith.negf %303 : vector<2x32xf32>
    %305 = math.exp %304 : vector<2x32xf32>
    %cst_86 = arith.constant 1.000000e+00 : f32
    %306 = vector.broadcast %cst_86 : f32 to vector<2x32xf32>
    %307 = arith.addf %306, %305 : vector<2x32xf32>
    %308 = arith.divf %306, %307 : vector<2x32xf32>
    %309 = vector.extract_strided_slice %299 {offsets = [0, 32], sizes = [2, 32], strides = [1, 1]} : vector<2x96xf32> to vector<2x32xf32>
    %310 = vector.extract_strided_slice %300 {offsets = [0, 32], sizes = [2, 32], strides = [1, 1]} : vector<2x96xf32> to vector<2x32xf32>
    %311 = arith.addf %309, %310 : vector<2x32xf32>
    %312 = arith.negf %311 : vector<2x32xf32>
    %313 = math.exp %312 : vector<2x32xf32>
    %cst_87 = arith.constant 1.000000e+00 : f32
    %314 = vector.broadcast %cst_87 : f32 to vector<2x32xf32>
    %315 = arith.addf %314, %313 : vector<2x32xf32>
    %316 = arith.divf %314, %315 : vector<2x32xf32>
    %317 = vector.extract_strided_slice %299 {offsets = [0, 64], sizes = [2, 32], strides = [1, 1]} : vector<2x96xf32> to vector<2x32xf32>
    %318 = vector.extract_strided_slice %300 {offsets = [0, 64], sizes = [2, 32], strides = [1, 1]} : vector<2x96xf32> to vector<2x32xf32>
    %319 = arith.addf %318, %294 : vector<2x32xf32>
    %320 = arith.mulf %308, %319 : vector<2x32xf32>
    %321 = arith.addf %317, %320 : vector<2x32xf32>
    %322 = math.tanh %321 : vector<2x32xf32>
    %cst_88 = arith.constant 1.000000e+00 : f32
    %323 = vector.broadcast %cst_88 : f32 to vector<2x32xf32>
    %324 = arith.subf %323, %316 : vector<2x32xf32>
    %325 = arith.mulf %324, %322 : vector<2x32xf32>
    %326 = arith.mulf %316, %295 : vector<2x32xf32>
    %327 = arith.addf %325, %326 : vector<2x32xf32>
    %c1_i32_89 = arith.constant 1 : i32
    %c2_i32_90 = arith.constant 2 : i32
    %328 = arith.muli %c1_i32_89, %c2_i32_90 : i32
    %329 = tpu.assume_multiple %328, 2 : i32
    %330 = arith.index_cast %329 : i32 to index
    %c0_91 = arith.constant 0 : index
    %331 = vector.load %arg14[%330, %c0_91] : memref<16x96xf32, #tpu.memory_space<vmem>>, vector<2x96xf32>
    %cst_92 = arith.constant dense<0.000000e+00> : vector<2x96xf32>
    %332 = tpu.matmul %327, %291, %cst_92 {dimension_numbers = #tpu.dot_dimension_numbers<[1], [0], [0], [1], [0, 0, 1, 1], [], []>} : vector<2x32xf32>, vector<32x96xf32>, vector<2x96xf32> -> vector<2x96xf32>
    %333 = vector.extract_strided_slice %331 {offsets = [0, 0], sizes = [2, 32], strides = [1, 1]} : vector<2x96xf32> to vector<2x32xf32>
    %334 = vector.extract_strided_slice %332 {offsets = [0, 0], sizes = [2, 32], strides = [1, 1]} : vector<2x96xf32> to vector<2x32xf32>
    %335 = arith.addf %333, %334 : vector<2x32xf32>
    %336 = arith.negf %335 : vector<2x32xf32>
    %337 = math.exp %336 : vector<2x32xf32>
    %cst_93 = arith.constant 1.000000e+00 : f32
    %338 = vector.broadcast %cst_93 : f32 to vector<2x32xf32>
    %339 = arith.addf %338, %337 : vector<2x32xf32>
    %340 = arith.divf %338, %339 : vector<2x32xf32>
    %341 = vector.extract_strided_slice %331 {offsets = [0, 32], sizes = [2, 32], strides = [1, 1]} : vector<2x96xf32> to vector<2x32xf32>
    %342 = vector.extract_strided_slice %332 {offsets = [0, 32], sizes = [2, 32], strides = [1, 1]} : vector<2x96xf32> to vector<2x32xf32>
    %343 = arith.addf %341, %342 : vector<2x32xf32>
    %344 = arith.negf %343 : vector<2x32xf32>
    %345 = math.exp %344 : vector<2x32xf32>
    %cst_94 = arith.constant 1.000000e+00 : f32
    %346 = vector.broadcast %cst_94 : f32 to vector<2x32xf32>
    %347 = arith.addf %346, %345 : vector<2x32xf32>
    %348 = arith.divf %346, %347 : vector<2x32xf32>
    %349 = vector.extract_strided_slice %331 {offsets = [0, 64], sizes = [2, 32], strides = [1, 1]} : vector<2x96xf32> to vector<2x32xf32>
    %350 = vector.extract_strided_slice %332 {offsets = [0, 64], sizes = [2, 32], strides = [1, 1]} : vector<2x96xf32> to vector<2x32xf32>
    %351 = arith.addf %350, %294 : vector<2x32xf32>
    %352 = arith.mulf %340, %351 : vector<2x32xf32>
    %353 = arith.addf %349, %352 : vector<2x32xf32>
    %354 = math.tanh %353 : vector<2x32xf32>
    %cst_95 = arith.constant 1.000000e+00 : f32
    %355 = vector.broadcast %cst_95 : f32 to vector<2x32xf32>
    %356 = arith.subf %355, %348 : vector<2x32xf32>
    %357 = arith.mulf %356, %354 : vector<2x32xf32>
    %358 = arith.mulf %348, %327 : vector<2x32xf32>
    %359 = arith.addf %357, %358 : vector<2x32xf32>
    %c2_i32_96 = arith.constant 2 : i32
    %c2_i32_97 = arith.constant 2 : i32
    %360 = arith.muli %c2_i32_96, %c2_i32_97 : i32
    %361 = tpu.assume_multiple %360, 2 : i32
    %362 = arith.index_cast %361 : i32 to index
    %c0_98 = arith.constant 0 : index
    %363 = vector.load %arg14[%362, %c0_98] : memref<16x96xf32, #tpu.memory_space<vmem>>, vector<2x96xf32>
    %cst_99 = arith.constant dense<0.000000e+00> : vector<2x96xf32>
    %364 = tpu.matmul %359, %291, %cst_99 {dimension_numbers = #tpu.dot_dimension_numbers<[1], [0], [0], [1], [0, 0, 1, 1], [], []>} : vector<2x32xf32>, vector<32x96xf32>, vector<2x96xf32> -> vector<2x96xf32>
    %365 = vector.extract_strided_slice %363 {offsets = [0, 0], sizes = [2, 32], strides = [1, 1]} : vector<2x96xf32> to vector<2x32xf32>
    %366 = vector.extract_strided_slice %364 {offsets = [0, 0], sizes = [2, 32], strides = [1, 1]} : vector<2x96xf32> to vector<2x32xf32>
    %367 = arith.addf %365, %366 : vector<2x32xf32>
    %368 = arith.negf %367 : vector<2x32xf32>
    %369 = math.exp %368 : vector<2x32xf32>
    %cst_100 = arith.constant 1.000000e+00 : f32
    %370 = vector.broadcast %cst_100 : f32 to vector<2x32xf32>
    %371 = arith.addf %370, %369 : vector<2x32xf32>
    %372 = arith.divf %370, %371 : vector<2x32xf32>
    %373 = vector.extract_strided_slice %363 {offsets = [0, 32], sizes = [2, 32], strides = [1, 1]} : vector<2x96xf32> to vector<2x32xf32>
    %374 = vector.extract_strided_slice %364 {offsets = [0, 32], sizes = [2, 32], strides = [1, 1]} : vector<2x96xf32> to vector<2x32xf32>
    %375 = arith.addf %373, %374 : vector<2x32xf32>
    %376 = arith.negf %375 : vector<2x32xf32>
    %377 = math.exp %376 : vector<2x32xf32>
    %cst_101 = arith.constant 1.000000e+00 : f32
    %378 = vector.broadcast %cst_101 : f32 to vector<2x32xf32>
    %379 = arith.addf %378, %377 : vector<2x32xf32>
    %380 = arith.divf %378, %379 : vector<2x32xf32>
    %381 = vector.extract_strided_slice %363 {offsets = [0, 64], sizes = [2, 32], strides = [1, 1]} : vector<2x96xf32> to vector<2x32xf32>
    %382 = vector.extract_strided_slice %364 {offsets = [0, 64], sizes = [2, 32], strides = [1, 1]} : vector<2x96xf32> to vector<2x32xf32>
    %383 = arith.addf %382, %294 : vector<2x32xf32>
    %384 = arith.mulf %372, %383 : vector<2x32xf32>
    %385 = arith.addf %381, %384 : vector<2x32xf32>
    %386 = math.tanh %385 : vector<2x32xf32>
    %cst_102 = arith.constant 1.000000e+00 : f32
    %387 = vector.broadcast %cst_102 : f32 to vector<2x32xf32>
    %388 = arith.subf %387, %380 : vector<2x32xf32>
    %389 = arith.mulf %388, %386 : vector<2x32xf32>
    %390 = arith.mulf %380, %359 : vector<2x32xf32>
    %391 = arith.addf %389, %390 : vector<2x32xf32>
    %c3_i32_103 = arith.constant 3 : i32
    %c2_i32_104 = arith.constant 2 : i32
    %392 = arith.muli %c3_i32_103, %c2_i32_104 : i32
    %393 = tpu.assume_multiple %392, 2 : i32
    %394 = arith.index_cast %393 : i32 to index
    %c0_105 = arith.constant 0 : index
    %395 = vector.load %arg14[%394, %c0_105] : memref<16x96xf32, #tpu.memory_space<vmem>>, vector<2x96xf32>
    %cst_106 = arith.constant dense<0.000000e+00> : vector<2x96xf32>
    %396 = tpu.matmul %391, %291, %cst_106 {dimension_numbers = #tpu.dot_dimension_numbers<[1], [0], [0], [1], [0, 0, 1, 1], [], []>} : vector<2x32xf32>, vector<32x96xf32>, vector<2x96xf32> -> vector<2x96xf32>
    %397 = vector.extract_strided_slice %395 {offsets = [0, 0], sizes = [2, 32], strides = [1, 1]} : vector<2x96xf32> to vector<2x32xf32>
    %398 = vector.extract_strided_slice %396 {offsets = [0, 0], sizes = [2, 32], strides = [1, 1]} : vector<2x96xf32> to vector<2x32xf32>
    %399 = arith.addf %397, %398 : vector<2x32xf32>
    %400 = arith.negf %399 : vector<2x32xf32>
    %401 = math.exp %400 : vector<2x32xf32>
    %cst_107 = arith.constant 1.000000e+00 : f32
    %402 = vector.broadcast %cst_107 : f32 to vector<2x32xf32>
    %403 = arith.addf %402, %401 : vector<2x32xf32>
    %404 = arith.divf %402, %403 : vector<2x32xf32>
    %405 = vector.extract_strided_slice %395 {offsets = [0, 32], sizes = [2, 32], strides = [1, 1]} : vector<2x96xf32> to vector<2x32xf32>
    %406 = vector.extract_strided_slice %396 {offsets = [0, 32], sizes = [2, 32], strides = [1, 1]} : vector<2x96xf32> to vector<2x32xf32>
    %407 = arith.addf %405, %406 : vector<2x32xf32>
    %408 = arith.negf %407 : vector<2x32xf32>
    %409 = math.exp %408 : vector<2x32xf32>
    %cst_108 = arith.constant 1.000000e+00 : f32
    %410 = vector.broadcast %cst_108 : f32 to vector<2x32xf32>
    %411 = arith.addf %410, %409 : vector<2x32xf32>
    %412 = arith.divf %410, %411 : vector<2x32xf32>
    %413 = vector.extract_strided_slice %395 {offsets = [0, 64], sizes = [2, 32], strides = [1, 1]} : vector<2x96xf32> to vector<2x32xf32>
    %414 = vector.extract_strided_slice %396 {offsets = [0, 64], sizes = [2, 32], strides = [1, 1]} : vector<2x96xf32> to vector<2x32xf32>
    %415 = arith.addf %414, %294 : vector<2x32xf32>
    %416 = arith.mulf %404, %415 : vector<2x32xf32>
    %417 = arith.addf %413, %416 : vector<2x32xf32>
    %418 = math.tanh %417 : vector<2x32xf32>
    %cst_109 = arith.constant 1.000000e+00 : f32
    %419 = vector.broadcast %cst_109 : f32 to vector<2x32xf32>
    %420 = arith.subf %419, %412 : vector<2x32xf32>
    %421 = arith.mulf %420, %418 : vector<2x32xf32>
    %422 = arith.mulf %412, %391 : vector<2x32xf32>
    %423 = arith.addf %421, %422 : vector<2x32xf32>
    %c4_i32_110 = arith.constant 4 : i32
    %c2_i32_111 = arith.constant 2 : i32
    %424 = arith.muli %c4_i32_110, %c2_i32_111 : i32
    %425 = tpu.assume_multiple %424, 2 : i32
    %426 = arith.index_cast %425 : i32 to index
    %c0_112 = arith.constant 0 : index
    %427 = vector.load %arg14[%426, %c0_112] : memref<16x96xf32, #tpu.memory_space<vmem>>, vector<2x96xf32>
    %cst_113 = arith.constant dense<0.000000e+00> : vector<2x96xf32>
    %428 = tpu.matmul %423, %291, %cst_113 {dimension_numbers = #tpu.dot_dimension_numbers<[1], [0], [0], [1], [0, 0, 1, 1], [], []>} : vector<2x32xf32>, vector<32x96xf32>, vector<2x96xf32> -> vector<2x96xf32>
    %429 = vector.extract_strided_slice %427 {offsets = [0, 0], sizes = [2, 32], strides = [1, 1]} : vector<2x96xf32> to vector<2x32xf32>
    %430 = vector.extract_strided_slice %428 {offsets = [0, 0], sizes = [2, 32], strides = [1, 1]} : vector<2x96xf32> to vector<2x32xf32>
    %431 = arith.addf %429, %430 : vector<2x32xf32>
    %432 = arith.negf %431 : vector<2x32xf32>
    %433 = math.exp %432 : vector<2x32xf32>
    %cst_114 = arith.constant 1.000000e+00 : f32
    %434 = vector.broadcast %cst_114 : f32 to vector<2x32xf32>
    %435 = arith.addf %434, %433 : vector<2x32xf32>
    %436 = arith.divf %434, %435 : vector<2x32xf32>
    %437 = vector.extract_strided_slice %427 {offsets = [0, 32], sizes = [2, 32], strides = [1, 1]} : vector<2x96xf32> to vector<2x32xf32>
    %438 = vector.extract_strided_slice %428 {offsets = [0, 32], sizes = [2, 32], strides = [1, 1]} : vector<2x96xf32> to vector<2x32xf32>
    %439 = arith.addf %437, %438 : vector<2x32xf32>
    %440 = arith.negf %439 : vector<2x32xf32>
    %441 = math.exp %440 : vector<2x32xf32>
    %cst_115 = arith.constant 1.000000e+00 : f32
    %442 = vector.broadcast %cst_115 : f32 to vector<2x32xf32>
    %443 = arith.addf %442, %441 : vector<2x32xf32>
    %444 = arith.divf %442, %443 : vector<2x32xf32>
    %445 = vector.extract_strided_slice %427 {offsets = [0, 64], sizes = [2, 32], strides = [1, 1]} : vector<2x96xf32> to vector<2x32xf32>
    %446 = vector.extract_strided_slice %428 {offsets = [0, 64], sizes = [2, 32], strides = [1, 1]} : vector<2x96xf32> to vector<2x32xf32>
    %447 = arith.addf %446, %294 : vector<2x32xf32>
    %448 = arith.mulf %436, %447 : vector<2x32xf32>
    %449 = arith.addf %445, %448 : vector<2x32xf32>
    %450 = math.tanh %449 : vector<2x32xf32>
    %cst_116 = arith.constant 1.000000e+00 : f32
    %451 = vector.broadcast %cst_116 : f32 to vector<2x32xf32>
    %452 = arith.subf %451, %444 : vector<2x32xf32>
    %453 = arith.mulf %452, %450 : vector<2x32xf32>
    %454 = arith.mulf %444, %423 : vector<2x32xf32>
    %455 = arith.addf %453, %454 : vector<2x32xf32>
    %c5_i32_117 = arith.constant 5 : i32
    %c2_i32_118 = arith.constant 2 : i32
    %456 = arith.muli %c5_i32_117, %c2_i32_118 : i32
    %457 = tpu.assume_multiple %456, 2 : i32
    %458 = arith.index_cast %457 : i32 to index
    %c0_119 = arith.constant 0 : index
    %459 = vector.load %arg14[%458, %c0_119] : memref<16x96xf32, #tpu.memory_space<vmem>>, vector<2x96xf32>
    %cst_120 = arith.constant dense<0.000000e+00> : vector<2x96xf32>
    %460 = tpu.matmul %455, %291, %cst_120 {dimension_numbers = #tpu.dot_dimension_numbers<[1], [0], [0], [1], [0, 0, 1, 1], [], []>} : vector<2x32xf32>, vector<32x96xf32>, vector<2x96xf32> -> vector<2x96xf32>
    %461 = vector.extract_strided_slice %459 {offsets = [0, 0], sizes = [2, 32], strides = [1, 1]} : vector<2x96xf32> to vector<2x32xf32>
    %462 = vector.extract_strided_slice %460 {offsets = [0, 0], sizes = [2, 32], strides = [1, 1]} : vector<2x96xf32> to vector<2x32xf32>
    %463 = arith.addf %461, %462 : vector<2x32xf32>
    %464 = arith.negf %463 : vector<2x32xf32>
    %465 = math.exp %464 : vector<2x32xf32>
    %cst_121 = arith.constant 1.000000e+00 : f32
    %466 = vector.broadcast %cst_121 : f32 to vector<2x32xf32>
    %467 = arith.addf %466, %465 : vector<2x32xf32>
    %468 = arith.divf %466, %467 : vector<2x32xf32>
    %469 = vector.extract_strided_slice %459 {offsets = [0, 32], sizes = [2, 32], strides = [1, 1]} : vector<2x96xf32> to vector<2x32xf32>
    %470 = vector.extract_strided_slice %460 {offsets = [0, 32], sizes = [2, 32], strides = [1, 1]} : vector<2x96xf32> to vector<2x32xf32>
    %471 = arith.addf %469, %470 : vector<2x32xf32>
    %472 = arith.negf %471 : vector<2x32xf32>
    %473 = math.exp %472 : vector<2x32xf32>
    %cst_122 = arith.constant 1.000000e+00 : f32
    %474 = vector.broadcast %cst_122 : f32 to vector<2x32xf32>
    %475 = arith.addf %474, %473 : vector<2x32xf32>
    %476 = arith.divf %474, %475 : vector<2x32xf32>
    %477 = vector.extract_strided_slice %459 {offsets = [0, 64], sizes = [2, 32], strides = [1, 1]} : vector<2x96xf32> to vector<2x32xf32>
    %478 = vector.extract_strided_slice %460 {offsets = [0, 64], sizes = [2, 32], strides = [1, 1]} : vector<2x96xf32> to vector<2x32xf32>
    %479 = arith.addf %478, %294 : vector<2x32xf32>
    %480 = arith.mulf %468, %479 : vector<2x32xf32>
    %481 = arith.addf %477, %480 : vector<2x32xf32>
    %482 = math.tanh %481 : vector<2x32xf32>
    %cst_123 = arith.constant 1.000000e+00 : f32
    %483 = vector.broadcast %cst_123 : f32 to vector<2x32xf32>
    %484 = arith.subf %483, %476 : vector<2x32xf32>
    %485 = arith.mulf %484, %482 : vector<2x32xf32>
    %486 = arith.mulf %476, %455 : vector<2x32xf32>
    %487 = arith.addf %485, %486 : vector<2x32xf32>
    %c6_i32_124 = arith.constant 6 : i32
    %c2_i32_125 = arith.constant 2 : i32
    %488 = arith.muli %c6_i32_124, %c2_i32_125 : i32
    %489 = tpu.assume_multiple %488, 2 : i32
    %490 = arith.index_cast %489 : i32 to index
    %c0_126 = arith.constant 0 : index
    %491 = vector.load %arg14[%490, %c0_126] : memref<16x96xf32, #tpu.memory_space<vmem>>, vector<2x96xf32>
    %cst_127 = arith.constant dense<0.000000e+00> : vector<2x96xf32>
    %492 = tpu.matmul %487, %291, %cst_127 {dimension_numbers = #tpu.dot_dimension_numbers<[1], [0], [0], [1], [0, 0, 1, 1], [], []>} : vector<2x32xf32>, vector<32x96xf32>, vector<2x96xf32> -> vector<2x96xf32>
    %493 = vector.extract_strided_slice %491 {offsets = [0, 0], sizes = [2, 32], strides = [1, 1]} : vector<2x96xf32> to vector<2x32xf32>
    %494 = vector.extract_strided_slice %492 {offsets = [0, 0], sizes = [2, 32], strides = [1, 1]} : vector<2x96xf32> to vector<2x32xf32>
    %495 = arith.addf %493, %494 : vector<2x32xf32>
    %496 = arith.negf %495 : vector<2x32xf32>
    %497 = math.exp %496 : vector<2x32xf32>
    %cst_128 = arith.constant 1.000000e+00 : f32
    %498 = vector.broadcast %cst_128 : f32 to vector<2x32xf32>
    %499 = arith.addf %498, %497 : vector<2x32xf32>
    %500 = arith.divf %498, %499 : vector<2x32xf32>
    %501 = vector.extract_strided_slice %491 {offsets = [0, 32], sizes = [2, 32], strides = [1, 1]} : vector<2x96xf32> to vector<2x32xf32>
    %502 = vector.extract_strided_slice %492 {offsets = [0, 32], sizes = [2, 32], strides = [1, 1]} : vector<2x96xf32> to vector<2x32xf32>
    %503 = arith.addf %501, %502 : vector<2x32xf32>
    %504 = arith.negf %503 : vector<2x32xf32>
    %505 = math.exp %504 : vector<2x32xf32>
    %cst_129 = arith.constant 1.000000e+00 : f32
    %506 = vector.broadcast %cst_129 : f32 to vector<2x32xf32>
    %507 = arith.addf %506, %505 : vector<2x32xf32>
    %508 = arith.divf %506, %507 : vector<2x32xf32>
    %509 = vector.extract_strided_slice %491 {offsets = [0, 64], sizes = [2, 32], strides = [1, 1]} : vector<2x96xf32> to vector<2x32xf32>
    %510 = vector.extract_strided_slice %492 {offsets = [0, 64], sizes = [2, 32], strides = [1, 1]} : vector<2x96xf32> to vector<2x32xf32>
    %511 = arith.addf %510, %294 : vector<2x32xf32>
    %512 = arith.mulf %500, %511 : vector<2x32xf32>
    %513 = arith.addf %509, %512 : vector<2x32xf32>
    %514 = math.tanh %513 : vector<2x32xf32>
    %cst_130 = arith.constant 1.000000e+00 : f32
    %515 = vector.broadcast %cst_130 : f32 to vector<2x32xf32>
    %516 = arith.subf %515, %508 : vector<2x32xf32>
    %517 = arith.mulf %516, %514 : vector<2x32xf32>
    %518 = arith.mulf %508, %487 : vector<2x32xf32>
    %519 = arith.addf %517, %518 : vector<2x32xf32>
    %c7_i32_131 = arith.constant 7 : i32
    %c2_i32_132 = arith.constant 2 : i32
    %520 = arith.muli %c7_i32_131, %c2_i32_132 : i32
    %521 = tpu.assume_multiple %520, 2 : i32
    %522 = arith.index_cast %521 : i32 to index
    %c0_133 = arith.constant 0 : index
    %523 = vector.load %arg14[%522, %c0_133] : memref<16x96xf32, #tpu.memory_space<vmem>>, vector<2x96xf32>
    %cst_134 = arith.constant dense<0.000000e+00> : vector<2x96xf32>
    %524 = tpu.matmul %519, %291, %cst_134 {dimension_numbers = #tpu.dot_dimension_numbers<[1], [0], [0], [1], [0, 0, 1, 1], [], []>} : vector<2x32xf32>, vector<32x96xf32>, vector<2x96xf32> -> vector<2x96xf32>
    %525 = vector.extract_strided_slice %523 {offsets = [0, 0], sizes = [2, 32], strides = [1, 1]} : vector<2x96xf32> to vector<2x32xf32>
    %526 = vector.extract_strided_slice %524 {offsets = [0, 0], sizes = [2, 32], strides = [1, 1]} : vector<2x96xf32> to vector<2x32xf32>
    %527 = arith.addf %525, %526 : vector<2x32xf32>
    %528 = arith.negf %527 : vector<2x32xf32>
    %529 = math.exp %528 : vector<2x32xf32>
    %cst_135 = arith.constant 1.000000e+00 : f32
    %530 = vector.broadcast %cst_135 : f32 to vector<2x32xf32>
    %531 = arith.addf %530, %529 : vector<2x32xf32>
    %532 = arith.divf %530, %531 : vector<2x32xf32>
    %533 = vector.extract_strided_slice %523 {offsets = [0, 32], sizes = [2, 32], strides = [1, 1]} : vector<2x96xf32> to vector<2x32xf32>
    %534 = vector.extract_strided_slice %524 {offsets = [0, 32], sizes = [2, 32], strides = [1, 1]} : vector<2x96xf32> to vector<2x32xf32>
    %535 = arith.addf %533, %534 : vector<2x32xf32>
    %536 = arith.negf %535 : vector<2x32xf32>
    %537 = math.exp %536 : vector<2x32xf32>
    %cst_136 = arith.constant 1.000000e+00 : f32
    %538 = vector.broadcast %cst_136 : f32 to vector<2x32xf32>
    %539 = arith.addf %538, %537 : vector<2x32xf32>
    %540 = arith.divf %538, %539 : vector<2x32xf32>
    %541 = vector.extract_strided_slice %523 {offsets = [0, 64], sizes = [2, 32], strides = [1, 1]} : vector<2x96xf32> to vector<2x32xf32>
    %542 = vector.extract_strided_slice %524 {offsets = [0, 64], sizes = [2, 32], strides = [1, 1]} : vector<2x96xf32> to vector<2x32xf32>
    %543 = arith.addf %542, %294 : vector<2x32xf32>
    %544 = arith.mulf %532, %543 : vector<2x32xf32>
    %545 = arith.addf %541, %544 : vector<2x32xf32>
    %546 = math.tanh %545 : vector<2x32xf32>
    %cst_137 = arith.constant 1.000000e+00 : f32
    %547 = vector.broadcast %cst_137 : f32 to vector<2x32xf32>
    %548 = arith.subf %547, %540 : vector<2x32xf32>
    %549 = arith.mulf %548, %546 : vector<2x32xf32>
    %550 = arith.mulf %540, %519 : vector<2x32xf32>
    %551 = arith.addf %549, %550 : vector<2x32xf32>
    %c8_i32_138 = arith.constant 8 : i32
    %c0_139 = arith.constant 0 : index
    %c0_140 = arith.constant 0 : index
    %552 = vector.load %arg9[%c0_139, %c0_140] : memref<32x32xf32, #tpu.memory_space<vmem>>, vector<32x32xf32>
    %cst_141 = arith.constant dense<0.000000e+00> : vector<2x32xf32>
    %553 = tpu.matmul %551, %552, %cst_141 {dimension_numbers = #tpu.dot_dimension_numbers<[1], [0], [0], [1], [0, 0, 1, 1], [], []>} : vector<2x32xf32>, vector<32x32xf32>, vector<2x32xf32> -> vector<2x32xf32>
    %c0_142 = arith.constant 0 : index
    %c0_143 = arith.constant 0 : index
    %554 = vector.load %arg10[%c0_142, %c0_143] : memref<1x32xf32, #tpu.memory_space<vmem>>, vector<1x32xf32>
    %555 = vector.broadcast %554 : vector<1x32xf32> to vector<2x32xf32>
    %556 = arith.addf %553, %555 : vector<2x32xf32>
    %cst_144 = arith.constant 0.000000e+00 : f32
    %557 = vector.broadcast %cst_144 : f32 to vector<2x32xf32>
    %558 = arith.maximumf %556, %557 : vector<2x32xf32>
    %c0_145 = arith.constant 0 : index
    %c0_146 = arith.constant 0 : index
    %559 = vector.load %arg11[%c0_145, %c0_146] : memref<32x1xf32, #tpu.memory_space<vmem>>, vector<32x1xf32>
    %cst_147 = arith.constant dense<0.000000e+00> : vector<2x1xf32>
    %560 = tpu.matmul %558, %559, %cst_147 {dimension_numbers = #tpu.dot_dimension_numbers<[1], [0], [0], [1], [0, 0, 1, 1], [], []>} : vector<2x32xf32>, vector<32x1xf32>, vector<2x1xf32> -> vector<2x1xf32>
    %c0_148 = arith.constant 0 : index
    %c0_149 = arith.constant 0 : index
    %561 = vector.load %arg12[%c0_148, %c0_149] : memref<1x1xf32, #tpu.memory_space<vmem>>, vector<1x1xf32>
    %562 = vector.broadcast %561 : vector<1x1xf32> to vector<2x1xf32>
    %563 = arith.addf %560, %562 : vector<2x1xf32>
    %564 = arith.negf %563 : vector<2x1xf32>
    %565 = math.exp %564 : vector<2x1xf32>
    %cst_150 = arith.constant 1.000000e+00 : f32
    %566 = vector.broadcast %cst_150 : f32 to vector<2x1xf32>
    %567 = arith.addf %566, %565 : vector<2x1xf32>
    %568 = arith.divf %566, %567 : vector<2x1xf32>
    %c0_151 = arith.constant 0 : index
    %c0_152 = arith.constant 0 : index
    %569 = vector.load %arg13[%c0_151, %c0_152] : memref<2x1xf32, #tpu.memory_space<vmem>>, vector<2x1xf32>
    tpu.vector_store %arg13[%c0_151, %c0_152], %568 {strides = array<i32>} : memref<2x1xf32, #tpu.memory_space<vmem>>, vector<2x1xf32>,
    return
  }
}

</mosaic_0001>

<bundles_post_ra>
// kernel: tpu_custom_call.1
= control target key start
LH: loop header
LB: loop body
LE: loop exit
PB: predicated region body
PF: predicated region fallthrough
CT: control target
= control target key end

     0   :  { %s3230_s0 = inlined_call_operand.vmem [shape: f32[16,8], index: 0, kind: input, shape index: {}]   ;;  %s3231_s1 = inlined_call_operand.hbm [shape: f32[8,96], index: 1, kind: input, shape index: {}]   ;;  %s3232_s2 = inlined_call_operand.vmem [shape: f32[1,96], index: 2, kind: input, shape index: {}]   ;;  %s3233_s3 = inlined_call_operand.vmem [shape: f32[32,96], index: 3, kind: input, shape index: {}]   ;;  %s3234_s4 = inlined_call_operand.vmem [shape: f32[1,32], index: 4, kind: input, shape index: {}]   ;;  %s3235_s5 = inlined_call_operand.vmem [shape: f32[32,96], index: 5, kind: input, shape index: {}]   ;;  %s3236_s6 = inlined_call_operand.vmem [shape: f32[1,96], index: 6, kind: input, shape index: {}]   ;;  %s3237_s7 = inlined_call_operand.hbm [shape: f32[32,96], index: 7, kind: input, shape index: {}]   ;;  %s3238_s8 = inlined_call_operand.vmem [shape: f32[1,32], index: 8, kind: input, shape index: {}]   ;;  %s3239_s9 = inlined_call_operand.hbm [shape: f32[32,32], index: 9, kind: input, shape index: {}]   ;;  %s3240_s10 = inlined_call_operand.vmem [shape: f32[1,32], index: 10, kind: input, shape index: {}]   ;;  %s3241_s11 = inlined_call_operand.vmem [shape: f32[32,1], index: 11, kind: input, shape index: {}]   ;;  %s3242_s12 = inlined_call_operand.<no memory space> [shape: f32[1,1], index: 12, kind: input, shape index: {}]   ;;  %s3243_s13 = inlined_call_operand.vmem [shape: f32[2,1], index: 13, kind: output, shape index: {}]  }
   0x1   :  { %v18_v0 = vstv %s3242_s12 }
   0x2   :  { %19 = vst [vmem:[#allocation4] sm:$0x1] %v18_v0 }
   0x3   :  { %20 = vsyncpa [#allocation6], 0 }
   0x4   :  { %21 = vsyncpa [#allocation8], 0  ;;  %s2815_s27 = smov [#allocation7]   ;;  %s2745_s14 = scalar_lea.hbm %s3237_s7, 512 }
   0x5   :  { %s49_s28 = sshll.u32 %s2815_s27, 4  ;;  %p2746_p0 = scmp.ne.s32.totalorder %s3237_s7, %s2745_s14  ;;  %s50_s28 = int_to_ptr.vmem [resolvable:$true] %s49_s28 }
   0x6   :  { %p2749_p1 = scmp.lt.u32.totalorder %s2745_s14, %s3237_s7 }
   0x8   :  { %p2751_p2 = pnand %p2749_p1, %p2746_p0 }
   0xa   :  { %2754 = shalt.err (!%p2751_p2)
}
   0xb   :  { %s2755_s12 = scalar_lea.vmem %s50_s28, 512  ;;  %p2760_p4 = scmp.lt.s32.totalorder %s50_s28, %s50_s28 }
   0xc   :  { %p2756_p3 = scmp.ne.s32.totalorder %s50_s28, %s2755_s12  ;;  %p2761_p5 = scmp.lt.s32.totalorder %s2755_s12, %s2755_s12 }
   0xe   :  { %p2762_p6 = por %p2761_p5, %p2760_p4 }
  0x10   :  { %p2763_p7 = pnand %p2762_p6, %p2756_p3 }
  0x12   :  { %2766 = shalt.err (!%p2763_p7)
}
  0x13   :  { %s2816_s19 = smov 128   ;;  %s2817_s20 = smov 8  }
  0x14   :  { %55 = dma.hbm_to_vmem [thread:$0]  %s3237_s7, 512, %s50_s28, [#allocation8], %s2816_s19, %s2816_s19, %s2817_s20  }
  0x15   :  { %s2818_s23 = smov [#allocation5]   ;;  %s2819_s25 = smov [#allocation9]  }
  0x16   :  { %s30_s24 = sshll.u32 %s2818_s23, 4  ;;  %s63_s26 = sshll.u32 %s2819_s25, 4  ;;  %s31_s24 = int_to_ptr.vmem [resolvable:$true] %s30_s24  ;;  %s64_s26 = int_to_ptr.vmem [resolvable:$true] %s63_s26 }
  0x17   :  { %s2767_s30 = scalar_lea.hbm %s3231_s1, 128 }
  0x18   :  { %p2768_p8 = scmp.ne.s32.totalorder %s3231_s1, %s2767_s30  ;;  %p2771_p9 = scmp.lt.u32.totalorder %s2767_s30, %s3231_s1 }
  0x1a   :  { %p2773_p10 = pnand %p2771_p9, %p2768_p8 }
  0x1c   :  { %2776 = shalt.err (!%p2773_p10)
}
  0x1d   :  { %s2777_s7 = scalar_lea.vmem %s31_s24, 128  ;;  %p2782_p12 = scmp.lt.s32.totalorder %s31_s24, %s31_s24 }
  0x1e   :  { %p2778_p11 = scmp.ne.s32.totalorder %s31_s24, %s2777_s7  ;;  %p2783_p13 = scmp.lt.s32.totalorder %s2777_s7, %s2777_s7 }
  0x20   :  { %p2784_p0 = por %p2783_p13, %p2782_p12 }
  0x22   :  { %p2785_p1 = pnand %p2784_p0, %p2778_p11 }
  0x24   :  { %2788 = shalt.err (!%p2785_p1)
}
  0x25   :  { %33 = dma.hbm_to_vmem [thread:$0]  %s3231_s1, 128, %s31_s24, [#allocation6]  }
  0x26   :  { %s2789_s22 = scalar_lea.hbm %s3239_s9, 512 }
  0x27   :  { %p2790_p2 = scmp.ne.s32.totalorder %s3239_s9, %s2789_s22  ;;  %p2793_p3 = scmp.lt.u32.totalorder %s2789_s22, %s3239_s9 }
  0x29   :  { %p2795_p4 = pnand %p2793_p3, %p2790_p2 }
  0x2b   :  { %2798 = shalt.err (!%p2795_p4)
}
  0x2c   :  { %s2799_s30 = scalar_lea.vmem %s64_s26, 512  ;;  %p2804_p6 = scmp.lt.s32.totalorder %s64_s26, %s64_s26 }
  0x2d   :  { %p2800_p5 = scmp.ne.s32.totalorder %s64_s26, %s2799_s30  ;;  %p2805_p7 = scmp.lt.s32.totalorder %s2799_s30, %s2799_s30 }
  0x2f   :  { %p2806_p8 = por %p2805_p7, %p2804_p6 }
  0x31   :  { %p2807_p9 = pnand %p2806_p8, %p2800_p5 }
  0x33   :  { %2810 = shalt.err (!%p2807_p9)
}
  0x34   :  { %69 = dma.hbm_to_vmem [thread:$0]  %s3239_s9, 512, %s64_s26, [#allocation8], %s2816_s19, %s2816_s19, %s2817_s20  }
  0x35   :  { %2811 = dma.done.wait [#allocation6], 128  }
  0x36   :  { %2812 = vsyncadd [#allocation6], 4294967168 }
  0x37   :  { %2813 = dma.done.wait [#allocation8], 1024  }
  0x38   :  { %2814 = vsyncadd [#allocation8], 4294966272  ;;  %v2820_v1 = vmov 0.0|0.0   ;;  %vm2821_vm0 = vmmov 0   ;;  %v2822_v2 = vmov 0.0   ;;  %vm95_vm1 = vcmask 64512  }
  0x39   :  { %2519 = vmatprep.subr.bf16.mxu1 %v2820_v1  ;;  %2318 = vmatprep.mubr.msk.f32.mxu1 %vm2821_vm0, %v2822_v2  ;;  %v87_v3 = vld [vmem:[#allocation5] sm:$0xff]  ;;  %v182_v8 = vld [vmem:[%s3233_s3 + $0x10] sm:$0xff]  ;;  %v183_v10 = vld [vmem:[%s3233_s3 + $0x18] sm:$0xff]  ;;  %s2823_s22 = smov 64   ;;  %vm177_vm2 = vcmask 785408   ;;  %vm299_vm3 = vcmask 254976  }
  0x3a   :  { %v85_v4 = vld [vmem:[%s3230_s0] sm:$0xff]  ;;  %v86_v5 = vld [vmem:[%s3230_s0 + $0x8] sm:$0xff]  ;;  %2305 = vmatprep.subr.mxu0 %v87_v3  ;;  %v2968_v12 = vpack.c.bf16 %v183_v10, %v182_v8  ;;  %vm191_vm4 = vcmask 261120   ;;  %vm2155_vm5 = vcmask 1024  }
  0x3b   :  { %2307 = vmatprep.mubr.msk.f32.mxu0 %vm95_vm1, %v85_v4  ;;  %v180_v6 = vld [vmem:[%s3233_s3] sm:$0xff]  ;;  %v181_v7 = vld [vmem:[%s3233_s3 + $0x8] sm:$0xff]  ;;  %2306 = vmatpush3.msra.mxu0 %v87_v3 }
  0x3c   :  { %v2958_v9 = vpack.c.bf16 %v181_v7, %v180_v6  ;;  %v2166_v11 = vld [vmem:[%s3234_s4] ss:$0 sm:$0xff]  ;;  %2308 = vmatmul.mubr.msk.f32.vlgmr.msra.gmra.mrb[0].mxu0 %vm95_vm1, %v86_v5  ;;  %2525 = vmatprep.subr.bf16.mxu0 %v2820_v1 }
  0x3d   :  { %272 = vrot.lane.b32.xlu0 %v2166_v11, %s2823_s22  ;;  %2329 = vmatprep.mubr.msk.f32.mxu0 %vm2821_vm0, %v2822_v2  ;;  %v2163_v13 = vld [vmem:[%s3232_s2] ss:$0 sm:$0xff]  ;;  %s2824_s2 = smov 96  }
  0x3e   :  { %2521 = vmatpush3.bf16.msra.mxu1 %v2958_v9  ;;  %2527 = vmatpush3.bf16.msra.mxu0 %v2958_v9 }
  0x3f   :  { %2522 = vmatprep.subr.bf16.mxu1 %v2820_v1  ;;  %2528 = vmatprep.subr.bf16.mxu0 %v2820_v1 }
  0x42   :  { %2524 = vmatpush3.bf16.msra.mxu1 %v2968_v12  ;;  %2530 = vmatpush3.bf16.msra.mxu0 %v2968_v12 }
  0x43   :  { %2531 = vmatprep.subr.bf16.mxu1 %v2820_v1  ;;  %2537 = vmatprep.subr.bf16.mxu0 %v2820_v1 }
  0x45   :  { %2319 = vmatmul.mubr.f32.vlgmr.msra.gmra.mrb[0].mxu1 %v2822_v2 }
  0x46   :  { %2533 = vmatpush3.bf16.msra.mxu1 %v2958_v9  ;;  %2340 = vmatprep.mubr.msk.f32.mxu1 %vm2821_vm0, %v2822_v2 }
  0x47   :  { %2534 = vmatprep.subr.bf16.mxu1 %v2820_v1 }
  0x4a   :  { %2536 = vmatpush3.bf16.msra.mxu1 %v2968_v12 }
  0x4b   :  { %2543 = vmatprep.subr.bf16.mxu1 %v2820_v1 }
  0xaf   :  { %v2992_v18 = vpop.permute.xlu0 %272 }
 0x10f   :  { %v2309_v14 = vpop.f32.mrb[0].mxu0 }
 0x110   :  { %v174_v15 = vadd.f32 %v2309_v14, %v2163_v13  ;;  %v168_v16 = vpop.f32.mrb[1].mxu0 }
 0x111   :  { %v169_v17 = vadd.f32 %v2163_v13, %v168_v16 }
 0x112   :  { %179 = vst.msk [vmem:[#allocation2 + $0x8] sm:$0xff] %vm177_vm2, %v174_v15 }
 0x113   :  { %178 = vst.msk [vmem:[#allocation2] sm:$0xff] %vm177_vm2, %v169_v17 }
 0x118   :  { %v261_v19 = vpop.f32.mrb[0].mxu1 }
 0x119   :  { %v275_v20 = vadd.f32 %v2992_v18, %v261_v19  ;;  %v2320_v21 = vpop.f32.mrb[1].mxu1 }
 0x11a   :  { %v190_v22 = vld [vmem:[#allocation2] sm:$0x3]  ;;  %v302_v42 = vld [vmem:[#allocation2 + $0x2] sm:$0x3]  ;;  %v409_v62 = vld [vmem:[#allocation2 + $0x4] sm:$0x3] }
 0x11b   :  { %277 = vrot.lane.b32.xlu0 %v275_v20, %s2823_s22  ;;  %v265_v23 = vadd.f32 %v261_v19, %v190_v22 }
 0x11d   :  { %v2167_v24 = vmul.f32 -1.442695, %v265_v23  ;;  %v516_v23 = vld [vmem:[#allocation2 + $0x6] sm:$0x3] }
 0x11f   :  { %2645 = vpow2.f32 %v2167_v24 }
 0x129   :  { %v2646_v25 = vpop.eup %2645 }
 0x12a   :  { %v269_v26 = vadd.f32 1.0, %v2646_v25 }
 0x12c   :  { %2647 = vrcp.f32 %v269_v26 }
 0x136   :  { %v2648_v27 = vpop.eup %2647 }
 0x137   :  { %v287_v33 = vsub.f32 1.0, %v2648_v27  ;;  %v293_v35 = vmul.f32 0.0, %v2648_v27 }
 0x18d   :  { %v278_v28 = vpop.permute.xlu0 %277 }
 0x18e   :  { %v280_v29 = vmul.f32 %v2648_v27, %v278_v28 }
 0x190   :  { %282 = vrot.lane.b32.xlu1 %v280_v29, %s2823_s22 }
 0x202   :  { %v283_v30 = vpop.permute.xlu1 %282 }
 0x203   :  { %v285_v31 = vadd.f32 %v283_v30, %v190_v22 }
 0x205   :  { %2649 = vtanh.f32 %v285_v31 }
 0x20f   :  { %v2650_v32 = vpop.eup %2649 }
 0x210   :  { %289 = vrot.lane.b32.xlu1 %v2650_v32, %s2824_s2 }
 0x282   :  { %v290_v34 = vpop.permute.xlu1 %289 }
 0x283   :  { %v292_v36 = vmul.f32 %v290_v34, %v287_v33 }
 0x285   :  { %v294_v37 = vadd.f32 %v293_v35, %v292_v36 }
 0x287   :  { %296 = vrot.lane.b32.xlu0 %v294_v37, %s2824_s2 }
 0x2f9   :  { %v297_v38 = vpop.permute.xlu0 %296 }
 0x2fa   :  { %300 = vst.msk [vmem:[#allocation3] sm:$0x3] %vm299_vm3, %v297_v38  ;;  %2330 = vmatmul.mubr.msk.f32.vlgmr.msra.gmra.mrb[2].mxu0 %vm191_vm4, %v297_v38 }
 0x2fb   :  { %2539 = vmatpush3.bf16.msra.mxu0 %v2958_v9  ;;  %2351 = vmatprep.mubr.msk.f32.mxu0 %vm2821_vm0, %v2822_v2 }
 0x2fc   :  { %2540 = vmatprep.subr.bf16.mxu0 %v2820_v1 }
 0x2ff   :  { %2542 = vmatpush3.bf16.msra.mxu0 %v2968_v12 }
 0x300   :  { %2549 = vmatprep.subr.bf16.mxu0 %v2820_v1 }
 0x3cd   :  { %v371_v39 = vpop.f32.mrb[2].mxu0 }
 0x3ce   :  { %v382_v40 = vadd.f32 %v371_v39, %v2992_v18  ;;  %v2331_v41 = vpop.f32.mrb[3].mxu0  ;;  %v375_v43 = vadd.f32 %v371_v39, %v302_v42 }
 0x3d0   :  { %384 = vrot.lane.b32.xlu1 %v382_v40, %s2823_s22  ;;  %v2169_v44 = vmul.f32 -1.442695, %v375_v43  ;;  %v623_v43 = vld [vmem:[#allocation2 + $0x8] sm:$0x3] }
 0x3d2   :  { %2651 = vpow2.f32 %v2169_v44 }
 0x3dc   :  { %v2652_v45 = vpop.eup %2651 }
 0x3dd   :  { %v379_v46 = vadd.f32 1.0, %v2652_v45 }
 0x3df   :  { %2653 = vrcp.f32 %v379_v46 }
 0x3e9   :  { %v2654_v47 = vpop.eup %2653 }
 0x3ea   :  { %v394_v53 = vsub.f32 1.0, %v2654_v47  ;;  %v400_v55 = vmul.f32 %v2654_v47, %v294_v37 }
 0x442   :  { %v385_v48 = vpop.permute.xlu1 %384 }
 0x443   :  { %v387_v49 = vmul.f32 %v2654_v47, %v385_v48 }
 0x445   :  { %389 = vrot.lane.b32.xlu0 %v387_v49, %s2823_s22 }
 0x4b7   :  { %v390_v50 = vpop.permute.xlu0 %389 }
 0x4b8   :  { %v392_v51 = vadd.f32 %v390_v50, %v302_v42 }
 0x4ba   :  { %2655 = vtanh.f32 %v392_v51 }
 0x4c4   :  { %v2656_v52 = vpop.eup %2655 }
 0x4c5   :  { %396 = vrot.lane.b32.xlu1 %v2656_v52, %s2824_s2 }
 0x537   :  { %v397_v54 = vpop.permute.xlu1 %396 }
 0x538   :  { %v399_v56 = vmul.f32 %v397_v54, %v394_v53 }
 0x53a   :  { %v401_v57 = vadd.f32 %v400_v55, %v399_v56 }
 0x53c   :  { %403 = vrot.lane.b32.xlu0 %v401_v57, %s2824_s2 }
 0x5ae   :  { %v404_v58 = vpop.permute.xlu0 %403 }
 0x5af   :  { %407 = vst.msk [vmem:[#allocation3 + $0x2] sm:$0x3] %vm299_vm3, %v404_v58  ;;  %2341 = vmatmul.mubr.msk.f32.vlgmr.msra.gmra.mrb[2].mxu1 %vm191_vm4, %v404_v58 }
 0x5b0   :  { %2545 = vmatpush3.bf16.msra.mxu1 %v2958_v9  ;;  %2362 = vmatprep.mubr.msk.f32.mxu1 %vm2821_vm0, %v2822_v2 }
 0x5b1   :  { %2546 = vmatprep.subr.bf16.mxu1 %v2820_v1 }
 0x5b4   :  { %2548 = vmatpush3.bf16.msra.mxu1 %v2968_v12 }
 0x5b5   :  { %2555 = vmatprep.subr.bf16.mxu1 %v2820_v1 }
 0x682   :  { %v478_v59 = vpop.f32.mrb[2].mxu1 }
 0x683   :  { %v489_v60 = vadd.f32 %v478_v59, %v2992_v18  ;;  %v2342_v61 = vpop.f32.mrb[3].mxu1  ;;  %v482_v63 = vadd.f32 %v478_v59, %v409_v62 }
 0x685   :  { %491 = vrot.lane.b32.xlu1 %v489_v60, %s2823_s22  ;;  %v2171_v0 = vmul.f32 -1.442695, %v482_v63  ;;  %v730_v63 = vld [vmem:[#allocation2 + $0xa] sm:$0x3] }
 0x687   :  { %2657 = vpow2.f32 %v2171_v0 }
 0x691   :  { %v2658_v3 = vpop.eup %2657 }
 0x692   :  { %v486_v4 = vadd.f32 1.0, %v2658_v3 }
 0x694   :  { %2659 = vrcp.f32 %v486_v4 }
 0x69e   :  { %v2660_v5 = vpop.eup %2659 }
 0x69f   :  { %v501_v13 = vsub.f32 1.0, %v2660_v5  ;;  %v507_v15 = vmul.f32 %v2660_v5, %v401_v57 }
 0x6f7   :  { %v492_v6 = vpop.permute.xlu1 %491 }
 0x6f8   :  { %v494_v7 = vmul.f32 %v2660_v5, %v492_v6 }
 0x6fa   :  { %496 = vrot.lane.b32.xlu0 %v494_v7, %s2823_s22 }
 0x76c   :  { %v497_v8 = vpop.permute.xlu0 %496 }
 0x76d   :  { %v499_v10 = vadd.f32 %v497_v8, %v409_v62 }
 0x76f   :  { %2661 = vtanh.f32 %v499_v10 }
 0x779   :  { %v2662_v11 = vpop.eup %2661 }
 0x77a   :  { %503 = vrot.lane.b32.xlu1 %v2662_v11, %s2824_s2 }
 0x7ec   :  { %v504_v14 = vpop.permute.xlu1 %503 }
 0x7ed   :  { %v506_v16 = vmul.f32 %v504_v14, %v501_v13 }
 0x7ef   :  { %v508_v17 = vadd.f32 %v507_v15, %v506_v16 }
 0x7f1   :  { %510 = vrot.lane.b32.xlu0 %v508_v17, %s2824_s2 }
 0x863   :  { %v511_v19 = vpop.permute.xlu0 %510 }
 0x864   :  { %514 = vst.msk [vmem:[#allocation3 + $0x4] sm:$0x3] %vm299_vm3, %v511_v19  ;;  %2352 = vmatmul.mubr.msk.f32.vlgmr.msra.gmra.mrb[4].mxu0 %vm191_vm4, %v511_v19 }
 0x865   :  { %2551 = vmatpush3.bf16.msra.mxu0 %v2958_v9  ;;  %2373 = vmatprep.mubr.msk.f32.mxu0 %vm2821_vm0, %v2822_v2 }
 0x866   :  { %2552 = vmatprep.subr.bf16.mxu0 %v2820_v1 }
 0x869   :  { %2554 = vmatpush3.bf16.msra.mxu0 %v2968_v12 }
 0x86a   :  { %2561 = vmatprep.subr.bf16.mxu0 %v2820_v1 }
 0x937   :  { %v585_v20 = vpop.f32.mrb[4].mxu0 }
 0x938   :  { %v596_v21 = vadd.f32 %v585_v20, %v2992_v18  ;;  %v2353_v22 = vpop.f32.mrb[5].mxu0  ;;  %v589_v24 = vadd.f32 %v585_v20, %v516_v23 }
 0x93a   :  { %598 = vrot.lane.b32.xlu1 %v596_v21, %s2823_s22  ;;  %v2173_v25 = vmul.f32 -1.442695, %v589_v24 }
 0x93c   :  { %2663 = vpow2.f32 %v2173_v25 }
 0x946   :  { %v2664_v26 = vpop.eup %2663 }
 0x947   :  { %v593_v27 = vadd.f32 1.0, %v2664_v26 }
 0x949   :  { %2665 = vrcp.f32 %v593_v27 }
 0x953   :  { %v2666_v28 = vpop.eup %2665 }
 0x954   :  { %v608_v34 = vsub.f32 1.0, %v2666_v28  ;;  %v614_v36 = vmul.f32 %v2666_v28, %v508_v17 }
 0x9ac   :  { %v599_v29 = vpop.permute.xlu1 %598 }
 0x9ad   :  { %v601_v30 = vmul.f32 %v2666_v28, %v599_v29 }
 0x9af   :  { %603 = vrot.lane.b32.xlu0 %v601_v30, %s2823_s22 }
 0xa21   :  { %v604_v31 = vpop.permute.xlu0 %603 }
 0xa22   :  { %v606_v32 = vadd.f32 %v604_v31, %v516_v23  ;;  %v837_v23 = vld [vmem:[#allocation2 + $0xc] sm:$0x3] }
 0xa24   :  { %2667 = vtanh.f32 %v606_v32 }
 0xa2e   :  { %v2668_v33 = vpop.eup %2667 }
 0xa2f   :  { %610 = vrot.lane.b32.xlu1 %v2668_v33, %s2824_s2 }
 0xaa1   :  { %v611_v35 = vpop.permute.xlu1 %610 }
 0xaa2   :  { %v613_v37 = vmul.f32 %v611_v35, %v608_v34 }
 0xaa4   :  { %v615_v38 = vadd.f32 %v614_v36, %v613_v37 }
 0xaa6   :  { %617 = vrot.lane.b32.xlu0 %v615_v38, %s2824_s2 }
 0xb18   :  { %v618_v39 = vpop.permute.xlu0 %617 }
 0xb19   :  { %621 = vst.msk [vmem:[#allocation3 + $0x6] sm:$0x3] %vm299_vm3, %v618_v39  ;;  %2363 = vmatmul.mubr.msk.f32.vlgmr.msra.gmra.mrb[4].mxu1 %vm191_vm4, %v618_v39 }
 0xb1a   :  { %2557 = vmatpush3.bf16.msra.mxu1 %v2958_v9  ;;  %2384 = vmatprep.mubr.msk.f32.mxu1 %vm2821_vm0, %v2822_v2 }
 0xb1b   :  { %2558 = vmatprep.subr.bf16.mxu1 %v2820_v1 }
 0xb1e   :  { %2560 = vmatpush3.bf16.msra.mxu1 %v2968_v12 }
 0xb20   :  { %v1050_v19 = vld [vmem:[#allocation3] sm:$0xff] }
 0xbec   :  { %v692_v40 = vpop.f32.mrb[4].mxu1 }
 0xbed   :  { %v703_v41 = vadd.f32 %v692_v40, %v2992_v18  ;;  %v2364_v42 = vpop.f32.mrb[5].mxu1  ;;  %v696_v44 = vadd.f32 %v692_v40, %v623_v43 }
 0xbef   :  { %705 = vrot.lane.b32.xlu1 %v703_v41, %s2823_s22  ;;  %v2175_v45 = vmul.f32 -1.442695, %v696_v44 }
 0xbf1   :  { %2669 = vpow2.f32 %v2175_v45 }
 0xbfb   :  { %v2670_v46 = vpop.eup %2669 }
 0xbfc   :  { %v700_v47 = vadd.f32 1.0, %v2670_v46 }
 0xbfe   :  { %2671 = vrcp.f32 %v700_v47 }
 0xc08   :  { %v2672_v48 = vpop.eup %2671 }
 0xc09   :  { %v715_v54 = vsub.f32 1.0, %v2672_v48  ;;  %v721_v56 = vmul.f32 %v2672_v48, %v615_v38 }
 0xc61   :  { %v706_v49 = vpop.permute.xlu1 %705 }
 0xc62   :  { %v708_v50 = vmul.f32 %v2672_v48, %v706_v49 }
 0xc64   :  { %710 = vrot.lane.b32.xlu0 %v708_v50, %s2823_s22 }
 0xcd6   :  { %v711_v51 = vpop.permute.xlu0 %710 }
 0xcd7   :  { %v713_v52 = vadd.f32 %v711_v51, %v623_v43  ;;  %v944_v43 = vld [vmem:[#allocation2 + $0xe] sm:$0x3] }
 0xcd9   :  { %2673 = vtanh.f32 %v713_v52 }
 0xce3   :  { %v2674_v53 = vpop.eup %2673 }
 0xce4   :  { %717 = vrot.lane.b32.xlu1 %v2674_v53, %s2824_s2  ;;  %v1146_v53 = vld [vmem:[#allocation7] sm:$0xff] }
 0xd56   :  { %v718_v55 = vpop.permute.xlu1 %717 }
 0xd57   :  { %v720_v57 = vmul.f32 %v718_v55, %v715_v54  ;;  %v1148_v54 = vld [vmem:[#allocation7 + $0x10] sm:$0xff] }
 0xd59   :  { %v722_v58 = vadd.f32 %v721_v56, %v720_v57  ;;  %v1149_v56 = vld [vmem:[#allocation7 + $0x18] sm:$0xff] }
 0xd5a   :  { %v3081_v57 = vpack.c.bf16 %v1149_v56, %v1148_v54 }
 0xd5b   :  { %724 = vrot.lane.b32.xlu0 %v722_v58, %s2824_s2 }
 0xdcd   :  { %v725_v59 = vpop.permute.xlu0 %724 }
 0xdce   :  { %728 = vst.msk [vmem:[#allocation3 + $0x8] sm:$0x3] %vm299_vm3, %v725_v59  ;;  %2374 = vmatmul.mubr.msk.f32.vlgmr.msra.gmra.mrb[6].mxu0 %vm191_vm4, %v725_v59  ;;  %v1052_v59 = vld [vmem:[%s3235_s5] sm:$0xff] }
 0xdcf   :  { %2563 = vmatpush3.bf16.msra.mxu0 %v2958_v9  ;;  %2395 = vmatprep.mubr.msk.f32.mxu0 %vm2821_vm0, %v2822_v2 }
 0xdd0   :  { %2564 = vmatprep.subr.bf16.mxu0 %v2820_v1 }
 0xdd3   :  { %2566 = vmatpush3.bf16.msra.mxu0 %v2968_v12 }
 0xdd4   :  { %2575 = vmatprep.subr.bf16.mxu0 %v2820_v1 }
 0xea1   :  { %v799_v60 = vpop.f32.mrb[6].mxu0 }
 0xea2   :  { %v810_v61 = vadd.f32 %v799_v60, %v2992_v18  ;;  %v2375_v62 = vpop.f32.mrb[7].mxu0  ;;  %v803_v0 = vadd.f32 %v799_v60, %v730_v63  ;;  %v1053_v60 = vld [vmem:[%s3235_s5 + $0x8] sm:$0xff] }
 0xea3   :  { %v1054_v62 = vld [vmem:[%s3235_s5 + $0x10] sm:$0xff] }
 0xea4   :  { %812 = vrot.lane.b32.xlu1 %v810_v61, %s2823_s22  ;;  %v2177_v3 = vmul.f32 -1.442695, %v803_v0  ;;  %v2567_v61 = vpack.c.bf16 %v1053_v60, %v1052_v59 }
 0xea6   :  { %2675 = vpow2.f32 %v2177_v3  ;;  %2568 = vmatprep.subr.bf16.mxu1 %v2567_v61 }
 0xeb0   :  { %v2676_v9 = vpop.eup %2675 }
 0xeb1   :  { %v807_v4 = vadd.f32 1.0, %v2676_v9 }
 0xeb3   :  { %2677 = vrcp.f32 %v807_v4  ;;  %v2185_v4 = vld [vmem:[%s3238_s8] ss:$0 sm:$0xff] }
 0xebd   :  { %v2678_v5 = vpop.eup %2677 }
 0xebe   :  { %v822_v11 = vsub.f32 1.0, %v2678_v5  ;;  %v828_v14 = vmul.f32 %v2678_v5, %v722_v58 }
 0xf16   :  { %v813_v6 = vpop.permute.xlu1 %812 }
 0xf17   :  { %v815_v7 = vmul.f32 %v2678_v5, %v813_v6 }
 0xf19   :  { %817 = vrot.lane.b32.xlu0 %v815_v7, %s2823_s22 }
 0xf8b   :  { %v818_v12 = vpop.permute.xlu0 %817 }
 0xf8c   :  { %v820_v8 = vadd.f32 %v818_v12, %v730_v63  ;;  %v1055_v63 = vld [vmem:[%s3235_s5 + $0x18] sm:$0xff] }
 0xf8d   :  { %v2571_v0 = vpack.c.bf16 %v1055_v63, %v1054_v62 }
 0xf8e   :  { %2679 = vtanh.f32 %v820_v8 }
 0xf98   :  { %v2680_v10 = vpop.eup %2679 }
 0xf99   :  { %824 = vrot.lane.b32.xlu1 %v2680_v10, %s2824_s2 }
0x100b   :  { %v825_v13 = vpop.permute.xlu1 %824 }
0x100c   :  { %v827_v15 = vmul.f32 %v825_v13, %v822_v11 }
0x100e   :  { %v829_v16 = vadd.f32 %v828_v14, %v827_v15  ;;  %v2182_v15 = vld [vmem:[%s3236_s6] ss:$0 sm:$0xff] }
0x1010   :  { %831 = vrot.lane.b32.xlu0 %v829_v16, %s2824_s2 }
0x1082   :  { %v832_v17 = vpop.permute.xlu0 %831 }
0x1083   :  { %835 = vst.msk [vmem:[#allocation3 + $0xa] sm:$0x3] %vm299_vm3, %v832_v17  ;;  %2385 = vmatmul.mubr.msk.f32.vlgmr.msra.gmra.mrb[6].mxu1 %vm191_vm4, %v832_v17 }
0x1084   :  { %2406 = vmatprep.mubr.msk.f32.mxu1 %vm191_vm4, %v1050_v19  ;;  %2570 = vmatpush3.bf16.msra.mxu1 %v2567_v61 }
0x1085   :  { %2572 = vmatprep.subr.bf16.mxu1 %v2571_v0 }
0x1088   :  { %2574 = vmatpush3.bf16.msra.mxu1 %v2571_v0 }
0x1089   :  { %2581 = vmatprep.subr.bf16.mxu1 %v2820_v1 }
0x1156   :  { %v906_v20 = vpop.f32.mrb[6].mxu1 }
0x1157   :  { %v917_v21 = vadd.f32 %v906_v20, %v2992_v18  ;;  %v2386_v22 = vpop.f32.mrb[7].mxu1  ;;  %v910_v24 = vadd.f32 %v906_v20, %v837_v23 }
0x1159   :  { %919 = vrot.lane.b32.xlu1 %v917_v21, %s2823_s22  ;;  %v2179_v25 = vmul.f32 -1.442695, %v910_v24 }
0x115b   :  { %2681 = vpow2.f32 %v2179_v25 }
0x1165   :  { %v2682_v26 = vpop.eup %2681 }
0x1166   :  { %v914_v27 = vadd.f32 1.0, %v2682_v26 }
0x1168   :  { %2683 = vrcp.f32 %v914_v27 }
0x1172   :  { %v2684_v28 = vpop.eup %2683 }
0x1173   :  { %v929_v34 = vsub.f32 1.0, %v2684_v28  ;;  %v935_v36 = vmul.f32 %v2684_v28, %v829_v16 }
0x11cb   :  { %v920_v29 = vpop.permute.xlu1 %919 }
0x11cc   :  { %v922_v30 = vmul.f32 %v2684_v28, %v920_v29 }
0x11ce   :  { %924 = vrot.lane.b32.xlu0 %v922_v30, %s2823_s22 }
0x1240   :  { %v925_v31 = vpop.permute.xlu0 %924 }
0x1241   :  { %v927_v32 = vadd.f32 %v925_v31, %v837_v23 }
0x1243   :  { %2685 = vtanh.f32 %v927_v32 }
0x124d   :  { %v2686_v33 = vpop.eup %2685 }
0x124e   :  { %931 = vrot.lane.b32.xlu1 %v2686_v33, %s2824_s2 }
0x12c0   :  { %v932_v35 = vpop.permute.xlu1 %931 }
0x12c1   :  { %v934_v37 = vmul.f32 %v932_v35, %v929_v34 }
0x12c3   :  { %v936_v38 = vadd.f32 %v935_v36, %v934_v37 }
0x12c5   :  { %938 = vrot.lane.b32.xlu0 %v936_v38, %s2824_s2 }
0x1337   :  { %v939_v39 = vpop.permute.xlu0 %938 }
0x1338   :  { %942 = vst.msk [vmem:[#allocation3 + $0xc] sm:$0x3] %vm299_vm3, %v939_v39  ;;  %2396 = vmatmul.mubr.msk.f32.vlgmr.msra.gmra.mrb[8].mxu0 %vm191_vm4, %v939_v39 }
0x1339   :  { %2417 = vmatprep.mubr.msk.f32.mxu0 %vm2821_vm0, %v2822_v2 }
0x140b   :  { %v1013_v40 = vpop.f32.mrb[8].mxu0 }
0x140c   :  { %v1024_v41 = vadd.f32 %v1013_v40, %v2992_v18  ;;  %v2397_v42 = vpop.f32.mrb[9].mxu0  ;;  %v1017_v44 = vadd.f32 %v1013_v40, %v944_v43  ;;  %v1147_v18 = vld [vmem:[#allocation7 + $0x8] sm:$0xff] }
0x140d   :  { %v3078_v55 = vpack.c.bf16 %v1147_v18, %v1146_v53 }
0x140e   :  { %1026 = vrot.lane.b32.xlu1 %v1024_v41, %s2823_s22  ;;  %v2181_v45 = vmul.f32 -1.442695, %v1017_v44 }
0x140f   :  { %2577 = vmatpush3.bf16.msra.mxu0 %v3078_v55 }
0x1410   :  { %2687 = vpow2.f32 %v2181_v45  ;;  %2578 = vmatprep.subr.bf16.mxu0 %v2820_v1 }
0x1413   :  { %2580 = vmatpush3.bf16.msra.mxu0 %v3081_v57 }
0x1414   :  { %2587 = vmatprep.subr.bf16.mxu0 %v2820_v1 }
0x1416   :  { %2418 = vmatmul.mubr.f32.vlgmr.msra.gmra.mrb[10].mxu0 %v2822_v2 }
0x1417   :  { %2589 = vmatpush3.bf16.msra.mxu0 %v3078_v55  ;;  %2439 = vmatprep.mubr.msk.f32.mxu0 %vm2821_vm0, %v2822_v2 }
0x1418   :  { %2590 = vmatprep.subr.bf16.mxu0 %v2820_v1 }
0x141a   :  { %v2688_v46 = vpop.eup %2687 }
0x141b   :  { %v1021_v47 = vadd.f32 1.0, %v2688_v46  ;;  %2592 = vmatpush3.bf16.msra.mxu0 %v3081_v57 }
0x141c   :  { %2599 = vmatprep.subr.bf16.mxu0 %v2820_v1 }
0x141d   :  { %2689 = vrcp.f32 %v1021_v47 }
0x1427   :  { %v2690_v48 = vpop.eup %2689 }
0x1428   :  { %v1036_v3 = vsub.f32 1.0, %v2690_v48  ;;  %v1042_v5 = vmul.f32 %v2690_v48, %v936_v38 }
0x1480   :  { %v1027_v49 = vpop.permute.xlu1 %1026 }
0x1481   :  { %v1029_v50 = vmul.f32 %v2690_v48, %v1027_v49 }
0x1483   :  { %1031 = vrot.lane.b32.xlu0 %v1029_v50, %s2823_s22 }
0x14e9   :  { %v1223_v12 = vpop.f32.mrb[10].mxu0 }
0x14ea   :  { %v2419_v8 = vpop.f32.mrb[11].mxu0 }
0x14f5   :  { %v1032_v51 = vpop.permute.xlu0 %1031 }
0x14f6   :  { %v1034_v52 = vadd.f32 %v1032_v51, %v944_v43 }
0x14f8   :  { %2691 = vtanh.f32 %v1034_v52 }
0x1502   :  { %v2692_v58 = vpop.eup %2691 }
0x1503   :  { %1038 = vrot.lane.b32.xlu1 %v2692_v58, %s2824_s2 }
0x1507   :  { %1234 = vrot.lane.b32.xlu1 %v2185_v4, %s2823_s22 }
0x1575   :  { %v1039_v9 = vpop.permute.xlu1 %1038 }
0x1576   :  { %v1041_v6 = vmul.f32 %v1039_v9, %v1036_v3 }
0x1578   :  { %v1043_v7 = vadd.f32 %v1042_v5, %v1041_v6 }
0x1579   :  { %v3112_v10 = vpop.permute.xlu1 %1234 }
0x157a   :  { %1045 = vrot.lane.b32.xlu0 %v1043_v7, %s2824_s2  ;;  %v1237_v11 = vadd.f32 %v3112_v10, %v1223_v12 }
0x157e   :  { %1239 = vrot.lane.b32.xlu0 %v1237_v11, %s2823_s22 }
0x15ec   :  { %v1046_v13 = vpop.permute.xlu0 %1045 }
0x15ed   :  { %1049 = vst.msk [vmem:[#allocation3 + $0xe] sm:$0x3] %vm299_vm3, %v1046_v13 }
0x15f0   :  { %v1240_v26 = vpop.permute.xlu0 %1239 }
0x15f4   :  { %v1051_v14 = vld [vmem:[#allocation3 + $0x8] sm:$0xff] }
0x15f5   :  { %2407 = vmatmul.mubr.msk.f32.vlgmr.msra.gmra.mrb[8].mxu1 %vm191_vm4, %v1051_v14 }
0x15f6   :  { %2583 = vmatpush3.bf16.msra.mxu1 %v3078_v55  ;;  %2428 = vmatprep.mubr.msk.f32.mxu1 %vm2821_vm0, %v2822_v2 }
0x15f7   :  { %2584 = vmatprep.subr.bf16.mxu1 %v2820_v1 }
0x15fa   :  { %2586 = vmatpush3.bf16.msra.mxu1 %v3081_v57 }
0x15fb   :  { %2593 = vmatprep.subr.bf16.mxu1 %v2820_v1 }
0x16c8   :  { %v2408_v16 = vpop.f32.mrb[8].mxu1 }
0x16c9   :  { %v1141_v17 = vadd.f32 %v2408_v16, %v2182_v15  ;;  %v1135_v19 = vpop.f32.mrb[9].mxu1 }
0x16ca   :  { %v1136_v20 = vadd.f32 %v2182_v15, %v1135_v19 }
0x16cb   :  { %1145 = vst.msk [vmem:[#allocation2 + $0x8] sm:$0xff] %vm177_vm2, %v1141_v17 }
0x16cc   :  { %1144 = vst.msk [vmem:[#allocation2] sm:$0xff] %vm177_vm2, %v1136_v20 }
0x16d3   :  { %v1156_v21 = vld [vmem:[#allocation2] sm:$0x3]  ;;  %v1257_v41 = vld [vmem:[#allocation2 + $0x2] sm:$0x3]  ;;  %v1360_v62 = vld [vmem:[#allocation2 + $0x4] sm:$0x3] }
0x16d4   :  { %v1227_v22 = vadd.f32 %v1223_v12, %v1156_v21 }
0x16d6   :  { %v2186_v23 = vmul.f32 -1.442695, %v1227_v22  ;;  %v1463_v22 = vld [vmem:[#allocation2 + $0x6] sm:$0x3] }
0x16d8   :  { %2693 = vpow2.f32 %v2186_v23 }
0x16e2   :  { %v2694_v24 = vpop.eup %2693 }
0x16e3   :  { %v1231_v25 = vadd.f32 1.0, %v2694_v24 }
0x16e5   :  { %2695 = vrcp.f32 %v1231_v25 }
0x16ef   :  { %v2696_v27 = vpop.eup %2695 }
0x16f0   :  { %v1242_v28 = vmul.f32 %v2696_v27, %v1240_v26  ;;  %v1249_v32 = vsub.f32 1.0, %v2696_v27  ;;  %v1255_v34 = vmul.f32 0.0, %v2696_v27 }
0x16f2   :  { %1244 = vrot.lane.b32.xlu1 %v1242_v28, %s2823_s22 }
0x1764   :  { %v1245_v29 = vpop.permute.xlu1 %1244 }
0x1765   :  { %v1247_v30 = vadd.f32 %v1245_v29, %v1156_v21 }
0x1767   :  { %2697 = vtanh.f32 %v1247_v30 }
0x1771   :  { %v2698_v31 = vpop.eup %2697 }
0x1772   :  { %1251 = vrot.lane.b32.xlu0 %v2698_v31, %s2824_s2 }
0x17e4   :  { %v1252_v33 = vpop.permute.xlu0 %1251 }
0x17e5   :  { %v1254_v35 = vmul.f32 %v1252_v33, %v1249_v32 }
0x17e7   :  { %v1256_v36 = vadd.f32 %v1255_v34, %v1254_v35 }
0x17e9   :  { %1259 = vrot.lane.b32.xlu1 %v1256_v36, %s2824_s2 }
0x185b   :  { %v1260_v37 = vpop.permute.xlu1 %1259 }
0x185c   :  { %2429 = vmatmul.mubr.msk.f32.vlgmr.msra.gmra.mrb[10].mxu1 %vm191_vm4, %v1260_v37 }
0x185d   :  { %2595 = vmatpush3.bf16.msra.mxu1 %v3078_v55  ;;  %2450 = vmatprep.mubr.msk.f32.mxu1 %vm2821_vm0, %v2822_v2 }
0x185e   :  { %2596 = vmatprep.subr.bf16.mxu1 %v2820_v1 }
0x1861   :  { %2598 = vmatpush3.bf16.msra.mxu1 %v3081_v57 }
0x1862   :  { %2605 = vmatprep.subr.bf16.mxu1 %v2820_v1 }
0x192f   :  { %v1329_v38 = vpop.f32.mrb[10].mxu1 }
0x1930   :  { %v1340_v39 = vadd.f32 %v1329_v38, %v3112_v10  ;;  %v2430_v40 = vpop.f32.mrb[11].mxu1  ;;  %v1333_v42 = vadd.f32 %v1329_v38, %v1257_v41 }
0x1932   :  { %1342 = vrot.lane.b32.xlu0 %v1340_v39, %s2823_s22  ;;  %v2188_v43 = vmul.f32 -1.442695, %v1333_v42  ;;  %v1566_v42 = vld [vmem:[#allocation2 + $0x8] sm:$0x3] }
0x1934   :  { %2699 = vpow2.f32 %v2188_v43 }
0x193e   :  { %v2700_v44 = vpop.eup %2699 }
0x193f   :  { %v1337_v45 = vadd.f32 1.0, %v2700_v44 }
0x1941   :  { %2701 = vrcp.f32 %v1337_v45 }
0x194b   :  { %v2702_v46 = vpop.eup %2701 }
0x194c   :  { %v1352_v52 = vsub.f32 1.0, %v2702_v46  ;;  %v1358_v18 = vmul.f32 %v2702_v46, %v1256_v36 }
0x19a4   :  { %v1343_v47 = vpop.permute.xlu0 %1342 }
0x19a5   :  { %v1345_v48 = vmul.f32 %v2702_v46, %v1343_v47 }
0x19a7   :  { %1347 = vrot.lane.b32.xlu1 %v1345_v48, %s2823_s22 }
0x1a19   :  { %v1348_v49 = vpop.permute.xlu1 %1347 }
0x1a1a   :  { %v1350_v50 = vadd.f32 %v1348_v49, %v1257_v41 }
0x1a1c   :  { %2703 = vtanh.f32 %v1350_v50 }
0x1a26   :  { %v2704_v51 = vpop.eup %2703 }
0x1a27   :  { %1354 = vrot.lane.b32.xlu0 %v2704_v51, %s2824_s2 }
0x1a99   :  { %v1355_v53 = vpop.permute.xlu0 %1354 }
0x1a9a   :  { %v1357_v54 = vmul.f32 %v1355_v53, %v1352_v52 }
0x1a9c   :  { %v1359_v56 = vadd.f32 %v1358_v18, %v1357_v54 }
0x1a9e   :  { %1362 = vrot.lane.b32.xlu1 %v1359_v56, %s2824_s2 }
0x1b10   :  { %v1363_v58 = vpop.permute.xlu1 %1362 }
0x1b11   :  { %2440 = vmatmul.mubr.msk.f32.vlgmr.msra.gmra.mrb[12].mxu0 %vm191_vm4, %v1363_v58 }
0x1b12   :  { %2601 = vmatpush3.bf16.msra.mxu0 %v3078_v55  ;;  %2461 = vmatprep.mubr.msk.f32.mxu0 %vm2821_vm0, %v2822_v2 }
0x1b13   :  { %2602 = vmatprep.subr.bf16.mxu0 %v2820_v1 }
0x1b16   :  { %2604 = vmatpush3.bf16.msra.mxu0 %v3081_v57 }
0x1b17   :  { %2611 = vmatprep.subr.bf16.mxu0 %v2820_v1 }
0x1be4   :  { %v1432_v59 = vpop.f32.mrb[12].mxu0 }
0x1be5   :  { %v1443_v60 = vadd.f32 %v1432_v59, %v3112_v10  ;;  %v2441_v61 = vpop.f32.mrb[13].mxu0  ;;  %v1436_v63 = vadd.f32 %v1432_v59, %v1360_v62 }
0x1be7   :  { %1445 = vrot.lane.b32.xlu0 %v1443_v60, %s2823_s22  ;;  %v2190_v0 = vmul.f32 -1.442695, %v1436_v63  ;;  %v1669_v63 = vld [vmem:[#allocation2 + $0xa] sm:$0x3] }
0x1be9   :  { %2705 = vpow2.f32 %v2190_v0 }
0x1bf3   :  { %v2706_v3 = vpop.eup %2705 }
0x1bf4   :  { %v1440_v9 = vadd.f32 1.0, %v2706_v3 }
0x1bf6   :  { %2707 = vrcp.f32 %v1440_v9 }
0x1c00   :  { %v2708_v4 = vpop.eup %2707 }
0x1c01   :  { %v1455_v11 = vsub.f32 1.0, %v2708_v4  ;;  %v1461_v14 = vmul.f32 %v2708_v4, %v1359_v56 }
0x1c59   :  { %v1446_v5 = vpop.permute.xlu0 %1445 }
0x1c5a   :  { %v1448_v6 = vmul.f32 %v2708_v4, %v1446_v5 }
0x1c5c   :  { %1450 = vrot.lane.b32.xlu1 %v1448_v6, %s2823_s22 }
0x1cce   :  { %v1451_v7 = vpop.permute.xlu1 %1450 }
0x1ccf   :  { %v1453_v12 = vadd.f32 %v1451_v7, %v1360_v62 }
0x1cd1   :  { %2709 = vtanh.f32 %v1453_v12 }
0x1cdb   :  { %v2710_v8 = vpop.eup %2709 }
0x1cdc   :  { %1457 = vrot.lane.b32.xlu0 %v2710_v8, %s2824_s2 }
0x1d4e   :  { %v1458_v13 = vpop.permute.xlu0 %1457 }
0x1d4f   :  { %v1460_v15 = vmul.f32 %v1458_v13, %v1455_v11 }
0x1d51   :  { %v1462_v16 = vadd.f32 %v1461_v14, %v1460_v15 }
0x1d53   :  { %1465 = vrot.lane.b32.xlu1 %v1462_v16, %s2824_s2 }
0x1dc5   :  { %v1466_v17 = vpop.permute.xlu1 %1465 }
0x1dc6   :  { %2451 = vmatmul.mubr.msk.f32.vlgmr.msra.gmra.mrb[12].mxu1 %vm191_vm4, %v1466_v17 }
0x1dc7   :  { %2607 = vmatpush3.bf16.msra.mxu1 %v3078_v55  ;;  %2472 = vmatprep.mubr.msk.f32.mxu1 %vm2821_vm0, %v2822_v2 }
0x1dc8   :  { %2608 = vmatprep.subr.bf16.mxu1 %v2820_v1 }
0x1dcb   :  { %2610 = vmatpush3.bf16.msra.mxu1 %v3081_v57 }
0x1dcc   :  { %2617 = vmatprep.subr.bf16.mxu1 %v2820_v1 }
0x1e99   :  { %v1535_v19 = vpop.f32.mrb[12].mxu1 }
0x1e9a   :  { %v1546_v20 = vadd.f32 %v1535_v19, %v3112_v10  ;;  %v2452_v21 = vpop.f32.mrb[13].mxu1  ;;  %v1539_v23 = vadd.f32 %v1535_v19, %v1463_v22 }
0x1e9b   :  { %v1772_v21 = vld [vmem:[#allocation2 + $0xc] sm:$0x3] }
0x1e9c   :  { %1548 = vrot.lane.b32.xlu0 %v1546_v20, %s2823_s22  ;;  %v2192_v24 = vmul.f32 -1.442695, %v1539_v23 }
0x1e9e   :  { %2711 = vpow2.f32 %v2192_v24 }
0x1ea8   :  { %v2712_v25 = vpop.eup %2711 }
0x1ea9   :  { %v1543_v26 = vadd.f32 1.0, %v2712_v25 }
0x1eab   :  { %2713 = vrcp.f32 %v1543_v26 }
0x1eb5   :  { %v2714_v27 = vpop.eup %2713 }
0x1eb6   :  { %v1558_v33 = vsub.f32 1.0, %v2714_v27  ;;  %v1564_v35 = vmul.f32 %v2714_v27, %v1462_v16 }
0x1f0e   :  { %v1549_v28 = vpop.permute.xlu0 %1548 }
0x1f0f   :  { %v1551_v29 = vmul.f32 %v2714_v27, %v1549_v28 }
0x1f11   :  { %1553 = vrot.lane.b32.xlu1 %v1551_v29, %s2823_s22 }
0x1f83   :  { %v1554_v30 = vpop.permute.xlu1 %1553 }
0x1f84   :  { %v1556_v31 = vadd.f32 %v1554_v30, %v1463_v22 }
0x1f86   :  { %2715 = vtanh.f32 %v1556_v31 }
0x1f90   :  { %v2716_v32 = vpop.eup %2715 }
0x1f91   :  { %1560 = vrot.lane.b32.xlu0 %v2716_v32, %s2824_s2 }
0x2003   :  { %v1561_v34 = vpop.permute.xlu0 %1560 }
0x2004   :  { %v1563_v36 = vmul.f32 %v1561_v34, %v1558_v33 }
0x2006   :  { %v1565_v37 = vadd.f32 %v1564_v35, %v1563_v36 }
0x2008   :  { %1568 = vrot.lane.b32.xlu1 %v1565_v37, %s2824_s2 }
0x207a   :  { %v1569_v38 = vpop.permute.xlu1 %1568 }
0x207b   :  { %2462 = vmatmul.mubr.msk.f32.vlgmr.msra.gmra.mrb[14].mxu0 %vm191_vm4, %v1569_v38 }
0x207c   :  { %2613 = vmatpush3.bf16.msra.mxu0 %v3078_v55  ;;  %2483 = vmatprep.mubr.msk.f32.mxu0 %vm2821_vm0, %v2822_v2 }
0x207d   :  { %2614 = vmatprep.subr.bf16.mxu0 %v2820_v1 }
0x2080   :  { %2616 = vmatpush3.bf16.msra.mxu0 %v3081_v57 }
0x2081   :  { %2623 = vmatprep.subr.bf16.mxu0 %v2820_v1 }
0x214e   :  { %v1638_v39 = vpop.f32.mrb[14].mxu0 }
0x214f   :  { %v1649_v40 = vadd.f32 %v1638_v39, %v3112_v10  ;;  %v2463_v41 = vpop.f32.mrb[15].mxu0  ;;  %v1642_v43 = vadd.f32 %v1638_v39, %v1566_v42 }
0x2150   :  { %v1875_v41 = vld [vmem:[#allocation2 + $0xe] sm:$0x3] }
0x2151   :  { %1651 = vrot.lane.b32.xlu0 %v1649_v40, %s2823_s22  ;;  %v2194_v44 = vmul.f32 -1.442695, %v1642_v43 }
0x2153   :  { %2717 = vpow2.f32 %v2194_v44 }
0x215d   :  { %v2718_v45 = vpop.eup %2717 }
0x215e   :  { %v1646_v46 = vadd.f32 1.0, %v2718_v45 }
0x2160   :  { %2719 = vrcp.f32 %v1646_v46 }
0x216a   :  { %v2720_v47 = vpop.eup %2719 }
0x216b   :  { %v1661_v53 = vsub.f32 1.0, %v2720_v47  ;;  %v1667_v54 = vmul.f32 %v2720_v47, %v1565_v37 }
0x21c3   :  { %v1652_v48 = vpop.permute.xlu0 %1651 }
0x21c4   :  { %v1654_v49 = vmul.f32 %v2720_v47, %v1652_v48 }
0x21c6   :  { %1656 = vrot.lane.b32.xlu1 %v1654_v49, %s2823_s22 }
0x2238   :  { %v1657_v50 = vpop.permute.xlu1 %1656 }
0x2239   :  { %v1659_v51 = vadd.f32 %v1657_v50, %v1566_v42  ;;  %v1978_v50 = vld [vmem:[#allocation9] sm:$0xff] }
0x223b   :  { %2721 = vtanh.f32 %v1659_v51  ;;  %v1980_v51 = vld [vmem:[#allocation9 + $0x10] sm:$0xff] }
0x2245   :  { %v2722_v52 = vpop.eup %2721 }
0x2246   :  { %1663 = vrot.lane.b32.xlu0 %v2722_v52, %s2824_s2 }
0x22b8   :  { %v1664_v18 = vpop.permute.xlu0 %1663 }
0x22b9   :  { %v1666_v56 = vmul.f32 %v1664_v18, %v1661_v53  ;;  %v1981_v53 = vld [vmem:[#allocation9 + $0x18] sm:$0xff] }
0x22ba   :  { %v2627_v18 = vpack.c.bf16 %v1981_v53, %v1980_v51 }
0x22bb   :  { %v1668_v58 = vadd.f32 %v1667_v54, %v1666_v56  ;;  %v2065_v56 = vld [vmem:[%s3241_s11] sm:$0xff] }
0x22bd   :  { %1671 = vrot.lane.b32.xlu1 %v1668_v58, %s2824_s2 }
0x232f   :  { %v1672_v59 = vpop.permute.xlu1 %1671 }
0x2330   :  { %2473 = vmatmul.mubr.msk.f32.vlgmr.msra.gmra.mrb[14].mxu1 %vm191_vm4, %v1672_v59 }
0x2331   :  { %2619 = vmatpush3.bf16.msra.mxu1 %v3078_v55  ;;  %2494 = vmatprep.mubr.msk.f32.mxu1 %vm2821_vm0, %v2822_v2 }
0x2332   :  { %2620 = vmatprep.subr.bf16.mxu1 %v2820_v1 }
0x2335   :  { %2622 = vmatpush3.bf16.msra.mxu1 %v3081_v57 }
0x2336   :  { %2629 = vmatprep.subr.bf16.mxu1 %v2820_v1 }
0x2403   :  { %v1741_v60 = vpop.f32.mrb[14].mxu1 }
0x2404   :  { %v1752_v61 = vadd.f32 %v1741_v60, %v3112_v10  ;;  %v2474_v62 = vpop.f32.mrb[15].mxu1  ;;  %v1745_v0 = vadd.f32 %v1741_v60, %v1669_v63 }
0x2406   :  { %1754 = vrot.lane.b32.xlu0 %v1752_v61, %s2823_s22  ;;  %v2196_v3 = vmul.f32 -1.442695, %v1745_v0 }
0x2408   :  { %2723 = vpow2.f32 %v2196_v3 }
0x2412   :  { %v2724_v55 = vpop.eup %2723 }
0x2413   :  { %v1749_v9 = vadd.f32 1.0, %v2724_v55  ;;  %v2067_v55 = vld [vmem:[%s3241_s11 + $0x10] sm:$0xff] }
0x2415   :  { %2725 = vrcp.f32 %v1749_v9  ;;  %v2068_v9 = vld [vmem:[%s3241_s11 + $0x18] sm:$0xff] }
0x241f   :  { %v2726_v4 = vpop.eup %2725 }
0x2420   :  { %v1764_v8 = vsub.f32 1.0, %v2726_v4  ;;  %v1770_v13 = vmul.f32 %v2726_v4, %v1668_v58  ;;  %v2066_v58 = vld [vmem:[%s3241_s11 + $0x8] sm:$0xff] }
0x2421   :  { %v2630_v59 = vpack.c.bf16 %v2066_v58, %v2065_v56 }
0x2478   :  { %v1755_v5 = vpop.permute.xlu0 %1754 }
0x2479   :  { %v1757_v6 = vmul.f32 %v2726_v4, %v1755_v5  ;;  %v2633_v4 = vpack.c.bf16 %v2068_v9, %v2067_v55 }
0x247b   :  { %1759 = vrot.lane.b32.xlu1 %v1757_v6, %s2823_s22 }
0x24ed   :  { %v1760_v57 = vpop.permute.xlu1 %1759 }
0x24ee   :  { %v1762_v7 = vadd.f32 %v1760_v57, %v1669_v63 }
0x24f0   :  { %2727 = vtanh.f32 %v1762_v7 }
0x24fa   :  { %v2728_v12 = vpop.eup %2727 }
0x24fb   :  { %1766 = vrot.lane.b32.xlu0 %v2728_v12, %s2824_s2  ;;  %v2203_v12 = vld [vmem:[#allocation4] ss:$0 sm:$0xff] }
0x256d   :  { %v1767_v11 = vpop.permute.xlu0 %1766 }
0x256e   :  { %v1769_v14 = vmul.f32 %v1767_v11, %v1764_v8 }
0x2570   :  { %v1771_v15 = vadd.f32 %v1770_v13, %v1769_v14 }
0x2572   :  { %1774 = vrot.lane.b32.xlu1 %v1771_v15, %s2824_s2 }
0x25e4   :  { %v1775_v16 = vpop.permute.xlu1 %1774 }
0x25e5   :  { %2484 = vmatmul.mubr.msk.f32.vlgmr.msra.gmra.mrb[16].mxu0 %vm191_vm4, %v1775_v16 }
0x25e6   :  { %2505 = vmatprep.mubr.msk.f32.mxu0 %vm2821_vm0, %v2822_v2 }
0x26b8   :  { %v1844_v17 = vpop.f32.mrb[16].mxu0 }
0x26b9   :  { %v1855_v19 = vadd.f32 %v1844_v17, %v3112_v10  ;;  %v2485_v20 = vpop.f32.mrb[17].mxu0  ;;  %v1848_v22 = vadd.f32 %v1844_v17, %v1772_v21 }
0x26bb   :  { %1857 = vrot.lane.b32.xlu0 %v1855_v19, %s2823_s22  ;;  %v2198_v23 = vmul.f32 -1.442695, %v1848_v22 }
0x26bd   :  { %2729 = vpow2.f32 %v2198_v23 }
0x26c7   :  { %v2730_v24 = vpop.eup %2729 }
0x26c8   :  { %v1852_v25 = vadd.f32 1.0, %v2730_v24 }
0x26ca   :  { %2731 = vrcp.f32 %v1852_v25 }
0x26d4   :  { %v2732_v26 = vpop.eup %2731 }
0x26d5   :  { %v1867_v32 = vsub.f32 1.0, %v2732_v26  ;;  %v1873_v34 = vmul.f32 %v2732_v26, %v1771_v15 }
0x272d   :  { %v1858_v27 = vpop.permute.xlu0 %1857 }
0x272e   :  { %v1860_v28 = vmul.f32 %v2732_v26, %v1858_v27 }
0x2730   :  { %1862 = vrot.lane.b32.xlu1 %v1860_v28, %s2823_s22 }
0x27a2   :  { %v1863_v29 = vpop.permute.xlu1 %1862 }
0x27a3   :  { %v1865_v30 = vadd.f32 %v1863_v29, %v1772_v21 }
0x27a5   :  { %2733 = vtanh.f32 %v1865_v30 }
0x27af   :  { %v2734_v31 = vpop.eup %2733 }
0x27b0   :  { %1869 = vrot.lane.b32.xlu0 %v2734_v31, %s2824_s2 }
0x2822   :  { %v1870_v33 = vpop.permute.xlu0 %1869 }
0x2823   :  { %v1872_v35 = vmul.f32 %v1870_v33, %v1867_v32 }
0x2825   :  { %v1874_v36 = vadd.f32 %v1873_v34, %v1872_v35 }
0x2827   :  { %1877 = vrot.lane.b32.xlu1 %v1874_v36, %s2824_s2 }
0x2899   :  { %v1878_v37 = vpop.permute.xlu1 %1877 }
0x289a   :  { %2495 = vmatmul.mubr.msk.f32.vlgmr.msra.gmra.mrb[16].mxu1 %vm191_vm4, %v1878_v37 }
0x289b   :  { %2516 = vmatprep.mubr.msk.f32.mxu1 %vm2821_vm0, %v2822_v2  ;;  %2631 = vmatpush3.bf16.msra.mxu1 %v2630_v59 }
0x289c   :  { %2632 = vmatprep.subr.bf16.mxu1 %v2820_v1 }
0x289f   :  { %2634 = vmatpush3.bf16.msra.mxu1 %v2633_v4 }
0x296d   :  { %v1947_v38 = vpop.f32.mrb[16].mxu1 }
0x296e   :  { %v1958_v39 = vadd.f32 %v1947_v38, %v3112_v10  ;;  %v2496_v40 = vpop.f32.mrb[17].mxu1  ;;  %v1951_v42 = vadd.f32 %v1947_v38, %v1875_v41  ;;  %v1979_v10 = vld [vmem:[#allocation9 + $0x8] sm:$0xff] }
0x296f   :  { %v2624_v52 = vpack.c.bf16 %v1979_v10, %v1978_v50 }
0x2970   :  { %1960 = vrot.lane.b32.xlu0 %v1958_v39, %s2823_s22  ;;  %v2200_v43 = vmul.f32 -1.442695, %v1951_v42 }
0x2971   :  { %2625 = vmatpush3.bf16.msra.mxu0 %v2624_v52 }
0x2972   :  { %2735 = vpow2.f32 %v2200_v43  ;;  %2626 = vmatprep.subr.bf16.mxu0 %v2820_v1  ;;  %v2201_v1 = vld [vmem:[%s3240_s10] ss:$0 sm:$0xff] }
0x2975   :  { %2628 = vmatpush3.bf16.msra.mxu0 %v2627_v18 }
0x297c   :  { %v2736_v44 = vpop.eup %2735 }
0x297d   :  { %v1955_v45 = vadd.f32 1.0, %v2736_v44 }
0x297f   :  { %2737 = vrcp.f32 %v1955_v45 }
0x2989   :  { %v2738_v46 = vpop.eup %2737 }
0x298a   :  { %v1970_v60 = vsub.f32 1.0, %v2738_v46  ;;  %v1976_v62 = vmul.f32 %v2738_v46, %v1874_v36 }
0x29e2   :  { %v1961_v47 = vpop.permute.xlu0 %1960 }
0x29e3   :  { %v1963_v48 = vmul.f32 %v2738_v46, %v1961_v47 }
0x29e5   :  { %1965 = vrot.lane.b32.xlu1 %v1963_v48, %s2823_s22 }
0x2a57   :  { %v1966_v49 = vpop.permute.xlu1 %1965 }
0x2a58   :  { %v1968_v2 = vadd.f32 %v1966_v49, %v1875_v41 }
0x2a5a   :  { %2739 = vtanh.f32 %v1968_v2 }
0x2a64   :  { %v2740_v54 = vpop.eup %2739 }
0x2a65   :  { %1972 = vrot.lane.b32.xlu0 %v2740_v54, %s2824_s2 }
0x2ad7   :  { %v1973_v61 = vpop.permute.xlu0 %1972 }
0x2ad8   :  { %v1975_v63 = vmul.f32 %v1973_v61, %v1970_v60 }
0x2ada   :  { %v1977_v0 = vadd.f32 %v1976_v62, %v1975_v63 }
0x2adc   :  { %1990 = vrot.lane.b32.xlu1 %v1977_v0, %s2824_s2 }
0x2b4e   :  { %v1991_v3 = vpop.permute.xlu1 %1990 }
0x2b4f   :  { %2506 = vmatmul.mubr.msk.f32.vlgmr.msra.gmra.mrb[18].mxu0 %vm191_vm4, %v1991_v3 }
0x2c22   :  { %v2060_v5 = vpop.f32.mrb[18].mxu0 }
0x2c23   :  { %v2061_v6 = vadd.f32 %v2201_v1, %v2060_v5  ;;  %v2507_v57 = vpop.f32.mrb[19].mxu0 }
0x2c25   :  { %v2064_v7 = vmax.f32 %v2061_v6, 0.0 }
0x2c27   :  { %2517 = vmatmul.mubr.msk.f32.vlgmr.msra.gmra.mrb[18].mxu1 %vm191_vm4, %v2064_v7 }
0x2cfa   :  { %v2145_v8 = vpop.f32.mrb[18].mxu1 }
0x2cfb   :  { %v2146_v11 = vadd.f32 %v2203_v12, %v2145_v8  ;;  %v2518_v13 = vpop.f32.mrb[19].mxu1 }
0x2cfd   :  { %v2205_v14 = vmul.f32 -1.442695, %v2146_v11 }
0x2cff   :  { %2741 = vpow2.f32 %v2205_v14 }
0x2d09   :  { %v2742_v15 = vpop.eup %2741 }
0x2d0a   :  { %v2152_v16 = vadd.f32 1.0, %v2742_v15 }
0x2d0c   :  { %2743 = vrcp.f32 %v2152_v16 }
0x2d16   :  { %v2744_v17 = vpop.eup %2743 }
0x2d17   :  { %2156 = vst.msk [vmem:[%s3243_s13] sm:$0x3] %vm2155_vm5, %v2744_v17 }
0x2d18   :  { %2161 = vsyncpa [#allocation6], 1 }
0x2d19   :  { %2162 = vsyncpa [#allocation8], 1 }

</bundles_post_ra>
